<compile_context>
chip_gen: v6e
topology: v6e:2x2x1
jax: 0.10.0
libtpu: 0.0.40
codegen_flags: <defaults>
</compile_context>

<pallas_src>
import functools

import jax
import jax.numpy as jnp
from jax import lax
from jax.experimental import pallas as pl
from jax.experimental.pallas import tpu as pltpu

K = 5              # conv kernel size
PAD = 2            # conv padding
HALO = 2 * PAD     # conv1+conv2 receptive-field halo: 4 rows per side
C_IN = 1025        # conv1 in_channels
C_MID = 32         # conv1 out_channels / conv2 in_channels
C_OUT = 1          # conv2 out_channels
KC = K * C_MID     # 160: tap-folded conv1 output width

LH_OFF = 4         # left-halo rows  [4, 8)      in the y scratch (rows 0..3: alignment pad)
MAIN_OFF = 8       # main tile rows  [8, 8+TL)   (8-sublane aligned big store)
MAX_TL = 2048      # VMEM-rechecked for v7x's 64 MiB (peak ~26 MiB incl. double buffers)
CHUNK = 128        # VPU-tail row chunk (live set ~35 vregs << 64)


def _cnn_small_kernel(x_ref, xh_ref, w1_ref, b1_ref, w2_ref, b2_ref, o_ref, y_ref,
                      *, l_true):
    """One (batch, L-tile) grid step.

    x_ref : (1, TL, C_IN)        f32       auto-pipelined input tile
    xh_ref: (1, 1, 2*HALO, C_IN) f32       auto-pipelined halo rows (left 4 | right 4);
                                           zero rows at sequence edges == conv1 zero pad
    w1_ref: (C_IN, KC)           bf16/f32  tap-folded conv1 weights
    b1_ref: (1, C_MID)           f32
    w2_ref: (K, C_MID)           f32
    b2_ref: (1, 1)               f32       SMEM scalar (conv2 bias with +2 prefolded)
    o_ref : (1, TL, 1)           f32       sublane-major output block
    y_ref : (TL + 3*HALO, KC)    f32       scratch: row r holds the tap-folded conv1
                                           contributions of x position t*TL + r - 8
    l_true: python int                     true (unpadded) sequence length, for masking
    """
    TL = x_ref.shape[1]
    t = pl.program_id(1)

    # Scalars / small constants first.
    b2v = b2_ref[0, 0]
    b1 = b1_ref[...]                       # (1, 32)  f32
    w2 = w2_ref[...]                       # (5, 32)  f32
    w1f = w1_ref[...]                      # (1025, 160)
    cdt = w1_ref.dtype                     # bf16 (default) or f32

    # ---- conv1, tap-folded: (TL,1025)@(1025,160) on the MXU (in-kernel cast) --------
    y_ref[MAIN_OFF:MAIN_OFF + TL, :] = jnp.dot(
        x_ref[0].astype(cdt), w1f, preferred_element_type=jnp.float32)

    # Halo rows (4 left | 4 right) in one tiny matmul.  Zero x rows give zero y rows,
    # which is exactly conv1's zero padding outside the sequence.
    yh = jnp.dot(xh_ref[0, 0].astype(cdt), w1f, preferred_element_type=jnp.float32)
    y_ref[LH_OFF:LH_OFF + HALO, :] = yh[0:HALO, :]
    y_ref[MAIN_OFF + TL:MAIN_OFF + TL + HALO, :] = yh[HALO:2 * HALO, :]

    # ---- VPU tail, chunked so the live set stays far below the 64-vreg file ---------
    c0 = 0
    while c0 < TL:                                   # static python loop
        cn = min(CHUNK, TL - c0)
        hs = cn + 2 * PAD                            # hidden rows needed by this chunk

        # Combine the 5 conv1 taps (row-shifted 32-lane column groups), bias, ReLU.
        h = y_ref[c0 + LH_OFF:c0 + LH_OFF + hs, 0:C_MID]
        for k in range(1, K):
            h = h + y_ref[c0 + LH_OFF + k:c0 + LH_OFF + k + hs,
                          k * C_MID:(k + 1) * C_MID]
        h = jnp.maximum(h + b1, 0.0)                 # (hs, 32)

        # conv2 zero-pads the *hidden* sequence: zero hidden rows whose absolute
        # position lies outside [0, l_true).
        row = lax.broadcasted_iota(jnp.int32, (hs, 1), 0)
        pos = t * TL + c0 - PAD + row
        h = jnp.where((pos >= 0) & (pos < l_true), h, 0.0)

        # conv2 (32 -> 1): 5 VPU multiply-adds + one 32-lane reduce, sublane-major store.
        acc = h[0:cn, :] * w2[0:1, :]
        for k in range(1, K):
            acc = acc + h[k:k + cn, :] * w2[k:k + 1, :]
        o_ref[0, c0:c0 + cn, :] = jnp.sum(acc, axis=-1, keepdims=True) + b2v

        c0 += cn


def _plan_tiles(length, max_tl):
    """Returns (tile_len, padded_len) with padded_len % tile_len == 0."""
    max_tl = max(128, min(int(max_tl), MAX_TL))
    if length <= max_tl:
        return length, length                        # one full-length tile, no padding
    for tl in (2048, 1024, 512, 256, 128):
        if tl <= max_tl and length % tl == 0:
            return tl, length
    tl = min(512, max_tl)                            # bounded tiles + zero pad + mask
    return tl, -(-length // tl) * tl


@functools.partial(jax.jit, static_argnames=("max_tl", "bf16"))
def cnn_small_forward(x, w1, b1, w2, b2, *, max_tl=MAX_TL, bf16=True):
    """x:  (B, L, 1025) f32 -- the tensor CNNSmall.forward receives.
    w1: (32, 1025, 5), b1: (32,), w2: (1, 32, 5), b2: (1,)   (PyTorch Conv1d layouts)
    returns (B, 1, L) f32 == conv2(relu(conv1(x.transpose(1,2)))) + 2
    """
    B, L, _ = x.shape
    TL, Lp = _plan_tiles(L, max_tl)
    num_t = Lp // TL

    x_p = x if Lp == L else jnp.pad(x, ((0, 0), (0, Lp - L), (0, 0)))

    # Gather every tile's 4-row left/right halos once in the wrapper (<1% of x traffic);
    # they ride the normal BlockSpec pipeline instead of per-step manual DMAs.
    if num_t == 1:
        xh = jnp.zeros((B, 1, 2 * HALO, C_IN), x.dtype)
    else:
        xr = x_p.reshape(B, num_t, TL, C_IN)
        zeros4 = jnp.zeros((B, 1, HALO, C_IN), x.dtype)
        halo_l = jnp.concatenate([zeros4, xr[:, :-1, TL - HALO:, :]], axis=1)
        halo_r = jnp.concatenate([xr[:, 1:, :HALO, :], zeros4], axis=1)
        xh = jnp.concatenate([halo_l, halo_r], axis=2)          # (B, num_t, 8, C_IN)

    cdt = jnp.bfloat16 if bf16 else jnp.float32
    w1f = jnp.transpose(w1, (1, 2, 0)).reshape(C_IN, KC).astype(cdt)   # tap-folded
    b1_t = b1.reshape(1, C_MID).astype(jnp.float32)
    w2_t = jnp.transpose(w2[0], (1, 0)).astype(jnp.float32)            # (K, 32)
    b2p2 = (b2.astype(jnp.float32) + 2.0).reshape(1, 1)                # bias + 2

    out = pl.pallas_call(
        functools.partial(_cnn_small_kernel, l_true=L),
        out_shape=jax.ShapeDtypeStruct((B, Lp, 1), jnp.float32),
        grid_spec=pltpu.PrefetchScalarGridSpec(
            num_scalar_prefetch=0,
            grid=(B, num_t),
            in_specs=[
                pl.BlockSpec((1, TL, C_IN), lambda b, t: (b, t, 0)),
                pl.BlockSpec((1, 1, 2 * HALO, C_IN), lambda b, t: (b, t, 0, 0)),
                pl.BlockSpec((C_IN, KC), lambda b, t: (0, 0)),
                pl.BlockSpec((1, C_MID), lambda b, t: (0, 0)),
                pl.BlockSpec((K, C_MID), lambda b, t: (0, 0)),
                pl.BlockSpec(memory_space=pltpu.MemorySpace.SMEM),     # scalar bias + 2
            ],
            out_specs=pl.BlockSpec((1, TL, 1), lambda b, t: (b, t, 0)),
            scratch_shapes=[pltpu.VMEM((TL + 3 * HALO, KC), jnp.float32)],
        ),
        compiler_params=pltpu.CompilerParams(
            dimension_semantics=("parallel", "parallel"),
            vmem_limit_bytes=48 * 1024 * 1024,
        ),
    )(x_p, xh, w1f, b1_t, w2_t, b2p2)

    # (B, Lp, 1) -> (B, 1, L): slice off the pad; the axis swap is a pure relabel of
    # contiguous memory (free).
    return out[:, :L, 0][:, None, :]


def _reference_forward(x, w1, b1, w2, b2, *, bf16=True):
    """Pure-JAX reference mirroring the PyTorch forward (NCW convs).

    With bf16=True the conv1 operands are rounded through bf16 exactly like the kernel,
    isolating kernel structure from the intentional bf16-operand optimization.
    """
    if bf16:
        x = x.astype(jnp.bfloat16).astype(jnp.float32)
        w1 = w1.astype(jnp.bfloat16).astype(jnp.float32)
    x_ncw = jnp.transpose(x, (0, 2, 1))                           # (B, C_IN, L)
    y = lax.conv_general_dilated(
        x_ncw, w1, window_strides=(1,), padding=((PAD, PAD),),
        dimension_numbers=("NCH", "OIH", "NCH"),
        precision=lax.Precision.HIGHEST)
    y = jnp.maximum(y + b1[None, :, None], 0.0)
    z = lax.conv_general_dilated(
        y, w2, window_strides=(1,), padding=((PAD, PAD),),
        dimension_numbers=("NCH", "OIH", "NCH"),
        precision=lax.Precision.HIGHEST)
    return z + b2[None, :, None] + 2.0


if __name__ == "__main__":
    key = jax.random.PRNGKey(0)
    k1, kb1, k2, kb2, kx1, kx2, kx3 = jax.random.split(key, 7)

    # Deterministic synthetic parameters (shapes from CNNSmall.__init__).
    w1 = jax.random.normal(k1, (C_MID, C_IN, K), jnp.float32) / jnp.sqrt(C_IN * K)
    b1 = jax.random.normal(kb1, (C_MID,), jnp.float32) * 0.1
    w2 = jax.random.normal(k2, (C_OUT, C_MID, K), jnp.float32) / jnp.sqrt(C_MID * K)
    b2 = jax.random.normal(kb2, (C_OUT,), jnp.float32) * 0.1

    # (2, 16): single tiny tile, exercises sequence-edge zero padding.
    # (1, 256) w/ max_tl=128: two 128-row tiles, exercises the halo path.
    # (1, 200) w/ max_tl=128: non-divisible L -> pad-to-256 + true-length mask + halo path.
    cases = [
        (kx1, (2, 16), MAX_TL),
        (kx2, (1, 256), 128),
        (kx3, (1, 200), 128),
    ]
    for kx, (B, L), max_tl in cases:
        x = jax.random.normal(kx, (B, L, C_IN), jnp.float32)
        out = jax.block_until_ready(cnn_small_forward(x, w1, b1, w2, b2, max_tl=max_tl))
        ref = jax.block_until_ready(_reference_forward(x, w1, b1, w2, b2, bf16=True))
        assert out.shape == (B, 1, L), out.shape
        err = float(jnp.max(jnp.abs(out - ref)))
        assert err < 2e-3, f"bf16 path max|err| = {err} for {(B, L, max_tl)}"

    # Full-precision path (bf16=False) sanity check at the smallest shape.
    x = jax.random.normal(kx1, (2, 16, C_IN), jnp.float32)
    out = jax.block_until_ready(cnn_small_forward(x, w1, b1, w2, b2, bf16=False))
    ref = jax.block_until_ready(_reference_forward(x, w1, b1, w2, b2, bf16=False))
    err = float(jnp.max(jnp.abs(out - ref)))
    assert err < 2e-3, f"f32 path max|err| = {err}"

    print("KERNEL_OK")
</pallas_src>

<mosaic_0001>
module attributes {stable_mosaic.version = 11 : i64} {
  func.func @_cnn_small_kernel(%arg0: i32, %arg1: i32, %arg2: memref<1x16x1025xf32, #tpu.memory_space<vmem>>, %arg3: memref<1x1x8x1025xf32, #tpu.memory_space<vmem>>, %arg4: memref<1025x160xbf16, #tpu.memory_space<vmem>>, %arg5: memref<1x32xf32, #tpu.memory_space<vmem>>, %arg6: memref<5x32xf32, #tpu.memory_space<vmem>>, %arg7: memref<1x1xf32, #tpu.memory_space<smem>>, %arg8: memref<1x16x1xf32, #tpu.memory_space<vmem>>, %arg9: memref<28x160xf32, #tpu.memory_space<vmem>>) attributes {dimension_semantics = [#tpu.dimension_semantics<parallel>, #tpu.dimension_semantics<parallel>], iteration_bounds = array<i64: 2, 1>, scalar_prefetch = 0 : i64, scratch_operands = 1 : i64, tpu.core_type = #tpu.core_type<tc>, window_params = [{transform_indices = @transform_0, window_bounds = array<i64: 1, 16, 1025>}, {transform_indices = @transform_1, window_bounds = array<i64: 1, 1, 8, 1025>}, {pipeline_mode = #tpu.pipeline_mode<synchronous>, transform_indices = @transform_2, window_bounds = array<i64: 1025, 160>}, {pipeline_mode = #tpu.pipeline_mode<synchronous>, transform_indices = @transform_3, window_bounds = array<i64: 1, 32>}, {pipeline_mode = #tpu.pipeline_mode<synchronous>, transform_indices = @transform_4, window_bounds = array<i64: 5, 32>}, {transform_indices = @transform_5, window_bounds = array<i64: 1, 1>}, {transform_indices = @transform_6, window_bounds = array<i64: 1, 16, 1>}]} {
    %c0 = arith.constant 0 : index
    %c0_0 = arith.constant 0 : index
    %0 = memref.load %arg7[%c0, %c0_0] : memref<1x1xf32, #tpu.memory_space<smem>>
    %c0_1 = arith.constant 0 : index
    %c0_2 = arith.constant 0 : index
    %1 = vector.load %arg5[%c0_1, %c0_2] : memref<1x32xf32, #tpu.memory_space<vmem>>, vector<1x32xf32>
    %c0_3 = arith.constant 0 : index
    %c0_4 = arith.constant 0 : index
    %2 = vector.load %arg6[%c0_3, %c0_4] : memref<5x32xf32, #tpu.memory_space<vmem>>, vector<5x32xf32>
    %c0_5 = arith.constant 0 : index
    %c0_6 = arith.constant 0 : index
    %3 = vector.load %arg4[%c0_5, %c0_6] : memref<1025x160xbf16, #tpu.memory_space<vmem>>, vector<1025x160xbf16>
    %c0_7 = arith.constant 0 : index
    %c0_8 = arith.constant 0 : index
    %c0_9 = arith.constant 0 : index
    %4 = vector.load %arg2[%c0_7, %c0_8, %c0_9] : memref<1x16x1025xf32, #tpu.memory_space<vmem>>, vector<1x16x1025xf32>
    %5 = vector.shape_cast %4 : vector<1x16x1025xf32> to vector<16x1025xf32>
    %6 = arith.truncf %5 : vector<16x1025xf32> to vector<16x1025xbf16>
    %cst = arith.constant dense<0.000000e+00> : vector<16x160xf32>
    %7 = tpu.matmul %6, %3, %cst {dimension_numbers = #tpu.dot_dimension_numbers<[1], [0], [0], [1], [0, 0, 1, 1], [], []>} : vector<16x1025xbf16>, vector<1025x160xbf16>, vector<16x160xf32> -> vector<16x160xf32>
    %c8 = arith.constant 8 : index
    %c0_10 = arith.constant 0 : index
    %8 = vector.load %arg9[%c8, %c0_10] : memref<28x160xf32, #tpu.memory_space<vmem>>, vector<16x160xf32>
    tpu.vector_store %arg9[%c8, %c0_10], %7 {strides = array<i32>} : memref<28x160xf32, #tpu.memory_space<vmem>>, vector<16x160xf32>,
    %c0_11 = arith.constant 0 : index
    %c0_12 = arith.constant 0 : index
    %c0_13 = arith.constant 0 : index
    %c0_14 = arith.constant 0 : index
    %9 = vector.load %arg3[%c0_11, %c0_12, %c0_13, %c0_14] : memref<1x1x8x1025xf32, #tpu.memory_space<vmem>>, vector<1x1x8x1025xf32>
    %10 = vector.shape_cast %9 : vector<1x1x8x1025xf32> to vector<8x1025xf32>
    %11 = arith.truncf %10 : vector<8x1025xf32> to vector<8x1025xbf16>
    %cst_15 = arith.constant dense<0.000000e+00> : vector<8x160xf32>
    %12 = tpu.matmul %11, %3, %cst_15 {dimension_numbers = #tpu.dot_dimension_numbers<[1], [0], [0], [1], [0, 0, 1, 1], [], []>} : vector<8x1025xbf16>, vector<1025x160xbf16>, vector<8x160xf32> -> vector<8x160xf32>
    %13 = vector.extract_strided_slice %12 {offsets = [0, 0], sizes = [4, 160], strides = [1, 1]} : vector<8x160xf32> to vector<4x160xf32>
    %c4 = arith.constant 4 : index
    %c0_16 = arith.constant 0 : index
    %14 = vector.load %arg9[%c4, %c0_16] : memref<28x160xf32, #tpu.memory_space<vmem>>, vector<4x160xf32>
    tpu.vector_store %arg9[%c4, %c0_16], %13 {strides = array<i32>} : memref<28x160xf32, #tpu.memory_space<vmem>>, vector<4x160xf32>,
    %15 = vector.extract_strided_slice %12 {offsets = [4, 0], sizes = [4, 160], strides = [1, 1]} : vector<8x160xf32> to vector<4x160xf32>
    %c24 = arith.constant 24 : index
    %c0_17 = arith.constant 0 : index
    %16 = vector.load %arg9[%c24, %c0_17] : memref<28x160xf32, #tpu.memory_space<vmem>>, vector<4x160xf32>
    tpu.vector_store %arg9[%c24, %c0_17], %15 {strides = array<i32>} : memref<28x160xf32, #tpu.memory_space<vmem>>, vector<4x160xf32>,
    %c4_18 = arith.constant 4 : index
    %c0_19 = arith.constant 0 : index
    %17 = vector.load %arg9[%c4_18, %c0_19] : memref<28x160xf32, #tpu.memory_space<vmem>>, vector<20x32xf32>
    %c5 = arith.constant 5 : index
    %c32 = arith.constant 32 : index
    %18 = vector.load %arg9[%c5, %c32] : memref<28x160xf32, #tpu.memory_space<vmem>>, vector<20x32xf32>
    %19 = arith.addf %17, %18 : vector<20x32xf32>
    %c6 = arith.constant 6 : index
    %c64 = arith.constant 64 : index
    %20 = vector.load %arg9[%c6, %c64] : memref<28x160xf32, #tpu.memory_space<vmem>>, vector<20x32xf32>
    %21 = arith.addf %19, %20 : vector<20x32xf32>
    %c7 = arith.constant 7 : index
    %c96 = arith.constant 96 : index
    %22 = vector.load %arg9[%c7, %c96] : memref<28x160xf32, #tpu.memory_space<vmem>>, vector<20x32xf32>
    %23 = arith.addf %21, %22 : vector<20x32xf32>
    %c8_20 = arith.constant 8 : index
    %c128 = arith.constant 128 : index
    %24 = vector.load %arg9[%c8_20, %c128] : memref<28x160xf32, #tpu.memory_space<vmem>>, vector<20x32xf32>
    %25 = arith.addf %23, %24 : vector<20x32xf32>
    %26 = vector.broadcast %1 : vector<1x32xf32> to vector<20x32xf32>
    %27 = arith.addf %25, %26 : vector<20x32xf32>
    %cst_21 = arith.constant 0.000000e+00 : f32
    %28 = vector.broadcast %cst_21 : f32 to vector<20x32xf32>
    %29 = arith.maximumf %27, %28 : vector<20x32xf32>
    %30 = tpu.iota {dimensions = array<i32: 0>} : vector<20x1xi32>
    %c16_i32 = arith.constant 16 : i32
    %31 = arith.muli %arg1, %c16_i32 : i32
    %c0_i32 = arith.constant 0 : i32
    %32 = arith.addi %31, %c0_i32 : i32
    %c2_i32 = arith.constant 2 : i32
    %33 = arith.subi %32, %c2_i32 : i32
    %34 = vector.broadcast %33 : i32 to vector<20x1xi32>
    %35 = arith.addi %34, %30 : vector<20x1xi32>
    %c0_i32_22 = arith.constant 0 : i32
    %36 = vector.broadcast %c0_i32_22 : i32 to vector<20x1xi32>
    %37 = arith.cmpi sge, %35, %36 : vector<20x1xi32>
    %c16_i32_23 = arith.constant 16 : i32
    %38 = vector.broadcast %c16_i32_23 : i32 to vector<20x1xi32>
    %39 = arith.cmpi slt, %35, %38 : vector<20x1xi32>
    %40 = arith.andi %37, %39 : vector<20x1xi1>
    %cst_24 = arith.constant 0.000000e+00 : f32
    %41 = vector.shape_cast %40 : vector<20x1xi1> to vector<20x1xi1>
    %42 = vector.broadcast %41 : vector<20x1xi1> to vector<20x32xi1>
    %43 = vector.broadcast %cst_24 : f32 to vector<20x32xf32>
    %44 = arith.select %42, %29, %43 : vector<20x32xi1>, vector<20x32xf32>
    %45 = vector.extract_strided_slice %44 {offsets = [0, 0], sizes = [16, 32], strides = [1, 1]} : vector<20x32xf32> to vector<16x32xf32>
    %46 = vector.extract_strided_slice %2 {offsets = [0, 0], sizes = [1, 32], strides = [1, 1]} : vector<5x32xf32> to vector<1x32xf32>
    %47 = vector.broadcast %46 : vector<1x32xf32> to vector<16x32xf32>
    %48 = arith.mulf %45, %47 : vector<16x32xf32>
    %49 = vector.extract_strided_slice %44 {offsets = [1, 0], sizes = [16, 32], strides = [1, 1]} : vector<20x32xf32> to vector<16x32xf32>
    %50 = vector.extract_strided_slice %2 {offsets = [1, 0], sizes = [1, 32], strides = [1, 1]} : vector<5x32xf32> to vector<1x32xf32>
    %51 = vector.broadcast %50 : vector<1x32xf32> to vector<16x32xf32>
    %52 = arith.mulf %49, %51 : vector<16x32xf32>
    %53 = arith.addf %48, %52 : vector<16x32xf32>
    %54 = vector.extract_strided_slice %44 {offsets = [2, 0], sizes = [16, 32], strides = [1, 1]} : vector<20x32xf32> to vector<16x32xf32>
    %55 = vector.extract_strided_slice %2 {offsets = [2, 0], sizes = [1, 32], strides = [1, 1]} : vector<5x32xf32> to vector<1x32xf32>
    %56 = vector.broadcast %55 : vector<1x32xf32> to vector<16x32xf32>
    %57 = arith.mulf %54, %56 : vector<16x32xf32>
    %58 = arith.addf %53, %57 : vector<16x32xf32>
    %59 = vector.extract_strided_slice %44 {offsets = [3, 0], sizes = [16, 32], strides = [1, 1]} : vector<20x32xf32> to vector<16x32xf32>
    %60 = vector.extract_strided_slice %2 {offsets = [3, 0], sizes = [1, 32], strides = [1, 1]} : vector<5x32xf32> to vector<1x32xf32>
    %61 = vector.broadcast %60 : vector<1x32xf32> to vector<16x32xf32>
    %62 = arith.mulf %59, %61 : vector<16x32xf32>
    %63 = arith.addf %58, %62 : vector<16x32xf32>
    %64 = vector.extract_strided_slice %44 {offsets = [4, 0], sizes = [16, 32], strides = [1, 1]} : vector<20x32xf32> to vector<16x32xf32>
    %65 = vector.extract_strided_slice %2 {offsets = [4, 0], sizes = [1, 32], strides = [1, 1]} : vector<5x32xf32> to vector<1x32xf32>
    %66 = vector.broadcast %65 : vector<1x32xf32> to vector<16x32xf32>
    %67 = arith.mulf %64, %66 : vector<16x32xf32>
    %68 = arith.addf %63, %67 : vector<16x32xf32>
    %cst_25 = arith.constant dense<0.000000e+00> : vector<16xf32>
    %69 = vector.multi_reduction <add>, %68, %cst_25 [1] : vector<16x32xf32> to vector<16xf32>
    %70 = vector.shape_cast %69 : vector<16xf32> to vector<16x1xf32>
    %71 = vector.broadcast %0 : f32 to vector<16x1xf32>
    %72 = arith.addf %70, %71 : vector<16x1xf32>
    %c0_26 = arith.constant 0 : index
    %c0_27 = arith.constant 0 : index
    %c0_28 = arith.constant 0 : index
    %73 = vector.load %arg8[%c0_26, %c0_27, %c0_28] : memref<1x16x1xf32, #tpu.memory_space<vmem>>, vector<1x16x1xf32>
    %74 = vector.shape_cast %73 : vector<1x16x1xf32> to vector<16x1xf32>
    %75 = vector.shape_cast %72 : vector<16x1xf32> to vector<1x16x1xf32>
    tpu.vector_store %arg8[%c0_26, %c0_27, %c0_28], %75 {strides = array<i32>} : memref<1x16x1xf32, #tpu.memory_space<vmem>>, vector<1x16x1xf32>,
    return
  }
  func.func @transform_0(%arg0: i32, %arg1: i32) -> (i32, i32, i32) {
    %c0_i32 = arith.constant 0 : i32
    %c0_i32_0 = arith.constant 0 : i32
    return %arg0, %arg1, %c0_i32 : i32, i32, i32
  }
  func.func @transform_1(%arg0: i32, %arg1: i32) -> (i32, i32, i32, i32) {
    %c0_i32 = arith.constant 0 : i32
    %c0_i32_0 = arith.constant 0 : i32
    %c0_i32_1 = arith.constant 0 : i32
    return %arg0, %arg1, %c0_i32, %c0_i32_0 : i32, i32, i32, i32
  }
  func.func @transform_2(%arg0: i32, %arg1: i32) -> (i32, i32) {
    %c0_i32 = arith.constant 0 : i32
    %c0_i32_0 = arith.constant 0 : i32
    %c0_i32_1 = arith.constant 0 : i32
    return %c0_i32, %c0_i32_0 : i32, i32
  }
  func.func @transform_3(%arg0: i32, %arg1: i32) -> (i32, i32) {
    %c0_i32 = arith.constant 0 : i32
    %c0_i32_0 = arith.constant 0 : i32
    %c0_i32_1 = arith.constant 0 : i32
    return %c0_i32, %c0_i32_0 : i32, i32
  }
  func.func @transform_4(%arg0: i32, %arg1: i32) -> (i32, i32) {
    %c0_i32 = arith.constant 0 : i32
    %c0_i32_0 = arith.constant 0 : i32
    %c0_i32_1 = arith.constant 0 : i32
    return %c0_i32, %c0_i32_0 : i32, i32
  }
  func.func @transform_5(%arg0: i32, %arg1: i32) -> (i32, i32) {
    %c0_i32 = arith.constant 0 : i32
    %c0_i32_0 = arith.constant 0 : i32
    %c0_i32_1 = arith.constant 0 : i32
    return %c0_i32, %c0_i32_0 : i32, i32
  }
  func.func @transform_6(%arg0: i32, %arg1: i32) -> (i32, i32, i32) {
    %c0_i32 = arith.constant 0 : i32
    %c0_i32_0 = arith.constant 0 : i32
    return %arg0, %arg1, %c0_i32 : i32, i32, i32
  }
}

</mosaic_0001>

<bundles_post_ra>
// kernel: cnn_small_forward.1
= control target key start
LH: loop header
LB: loop body
LE: loop exit
PB: predicated region body
PF: predicated region fallthrough
CT: control target
= control target key end

     0   :  { %s2390_s23 = smov 0   ;;  %s2392_s24 = smov 0   ;;  %s3433_s0 = inlined_call_operand.vmem [shape: f32[2,16,1025], index: 0, kind: input, shape index: {}]   ;;  %s3434_s1 = inlined_call_operand.vmem [shape: f32[2,1,8,1025], index: 1, kind: input, shape index: {}]   ;;  %s3435_s2 = inlined_call_operand.vmem [shape: bf16[1025,160], index: 2, kind: input, shape index: {}]   ;;  %s3436_s3 = inlined_call_operand.vmem [shape: f32[1,32], index: 3, kind: input, shape index: {}]   ;;  %s3437_s4 = inlined_call_operand.vmem [shape: f32[5,32], index: 4, kind: input, shape index: {}]   ;;  %s3438_s5 = inlined_call_operand.<no memory space> [shape: f32[1,1], index: 5, kind: input, shape index: {}]   ;;  %s3439_s6 = inlined_call_operand.vmem [shape: f32[2,16,1], index: 6, kind: output, shape index: {}]  }
   0x1   :  { %11 = sst [smem:[#allocation3]] %s3438_s5  ;;  %s2394_s25 = smov 0  }
   0x2 LB: > { %s29_s5 = sadd.s32 1, %s2342_s24  ;;  %p1959_p0 = scmp.ge.s32.totalorder %s2346_s25, 1  ;;  %s2346_s25 = sphi %s2394_s25, %s17_s25   ;;  %s2342_s24 = sphi %s2392_s24, %s3675_s24   ;;  %s2338_s23 = sphi %s2390_s23, %s3674_s23  }
   0x3   : > { %p31_p1 = scmp.ge.s32.totalorder %s29_s5, 2  ;;  %p251_p2 = scmp.lt.s32.totalorder %s2346_s25, 3 }
   0x5   : > { %s3677_s5 = smov (%p31_p1, %s29_s5), 0  ;;  %p252_p3 = pnand %p1959_p0, %p251_p2 }
   0x7   : > { %255 = sbr.rel (%p252_p3) target bundleno = 782 (0x30e), region = 44 }
   0xc   : > { %v2413_v0 = vld [vmem:[%s3435_s2 + $0x74] ss:$8 sps:$4 sm:$0xff]   ;;  %v2424_v2 = vld [vmem:[%s3435_s2 + $0x70] ss:$8 sps:$4 sm:$0xff]   ;;  %v2435_v4 = vld [vmem:[%s3435_s2 + $0x64] ss:$8 sps:$4 sm:$0xff]  }
   0xd   : > { %v2418_v1 = vld [vmem:[%s3435_s2 + $0x174] ss:$8 sps:$4 sm:$0xff]   ;;  %1147 = vmatprep.subr.bf16.mxu0 %v2413_v0  ;;  %v2429_v3 = vld [vmem:[%s3435_s2 + $0x170] ss:$8 sps:$4 sm:$0xff]   ;;  %v2442_v5 = vld [vmem:[%s3435_s2 + $0x164] ss:$8 sps:$4 sm:$0xff]  }
   0xe   : > { %1190 = vmatprep.subr.bf16.mxu1 %v2418_v1  ;;  %1148 = vmatpush1.bf16.msra.mxu0 %v2424_v2  ;;  %v2447_v6 = vld [vmem:[%s3435_s2 + $0x60] ss:$8 sps:$4 sm:$0xff]   ;;  %v2459_v8 = vld [vmem:[%s3435_s2 + $0x54] ss:$8 sps:$4 sm:$0xff]   ;;  %v2469_v10 = vld [vmem:[%s3435_s2 + $0x50] ss:$8 sps:$4 sm:$0xff]  }
   0xf   : > { %1191 = vmatpush1.bf16.msra.mxu1 %v2429_v3  ;;  %1149 = vmatprep.subr.bf16.mxu0 %v2435_v4  ;;  %v2453_v7 = vld [vmem:[%s3435_s2 + $0x160] ss:$8 sps:$4 sm:$0xff]   ;;  %v2464_v9 = vld [vmem:[%s3435_s2 + $0x154] ss:$8 sps:$4 sm:$0xff]   ;;  %v2474_v11 = vld [vmem:[%s3435_s2 + $0x150] ss:$8 sps:$4 sm:$0xff]  }
  0x10   : > { %1192 = vmatprep.subr.bf16.mxu1 %v2442_v5  ;;  %v2481_v12 = vld [vmem:[%s3435_s2 + $0x44] ss:$8 sps:$4 sm:$0xff]   ;;  %v2493_v14 = vld [vmem:[%s3435_s2 + $0x40] ss:$8 sps:$4 sm:$0xff]   ;;  %v2505_v16 = vld [vmem:[%s3435_s2 + $0x34] ss:$8 sps:$4 sm:$0xff]  }
  0x11   : > { %v2488_v13 = vld [vmem:[%s3435_s2 + $0x144] ss:$8 sps:$4 sm:$0xff]   ;;  %v2500_v15 = vld [vmem:[%s3435_s2 + $0x140] ss:$8 sps:$4 sm:$0xff]   ;;  %v2512_v17 = vld [vmem:[%s3435_s2 + $0x134] ss:$8 sps:$4 sm:$0xff]  }
  0x12   : > { %1150 = vmatpush1.bf16.msra.mxu0 %v2447_v6  ;;  %v2517_v18 = vld [vmem:[%s3435_s2 + $0x30] ss:$8 sps:$4 sm:$0xff]   ;;  %v2529_v20 = vld [vmem:[%s3435_s2 + $0x24] ss:$8 sps:$4 sm:$0xff]   ;;  %v2541_v22 = vld [vmem:[%s3435_s2 + $0x20] ss:$8 sps:$4 sm:$0xff]  }
  0x13   : > { %1193 = vmatpush1.bf16.msra.mxu1 %v2453_v7  ;;  %1151 = vmatprep.subr.bf16.mxu0 %v2459_v8  ;;  %v2522_v19 = vld [vmem:[%s3435_s2 + $0x130] ss:$8 sps:$4 sm:$0xff]   ;;  %v2536_v21 = vld [vmem:[%s3435_s2 + $0x124] ss:$8 sps:$4 sm:$0xff]   ;;  %v2548_v23 = vld [vmem:[%s3435_s2 + $0x120] ss:$8 sps:$4 sm:$0xff]  }
  0x14   : > { %1194 = vmatprep.subr.bf16.mxu1 %v2464_v9  ;;  %v2553_v24 = vld [vmem:[%s3435_s2 + $0x14] ss:$8 sps:$4 sm:$0xff]   ;;  %v2565_v26 = vld [vmem:[%s3435_s2 + $0x10] ss:$8 sps:$4 sm:$0xff]   ;;  %v2577_v28 = vld [vmem:[%s3435_s2 + $0x4] ss:$8 sps:$4 sm:$0xff]  }
  0x15   : > { %v2560_v25 = vld [vmem:[%s3435_s2 + $0x114] ss:$8 sps:$4 sm:$0xff]   ;;  %v2570_v27 = vld [vmem:[%s3435_s2 + $0x110] ss:$8 sps:$4 sm:$0xff]   ;;  %v2584_v29 = vld [vmem:[%s3435_s2 + $0x104] ss:$8 sps:$4 sm:$0xff]  }
  0x16   : > { %1152 = vmatpush1.bf16.msra.mxu0 %v2469_v10  ;;  %v2589_v30 = vld [vmem:[%s3435_s2] ss:$8 sps:$4 sm:$0xff]   ;;  %p300_p4 = scmp.lt.s32.totalorder %s2338_s23, 1  ;;  %v2602_v32 = vld [vmem:[%s3435_s2 + $0xf4] ss:$8 sps:$4 sm:$0xff]   ;;  %vm1138_vm0 = vcmask 1040384  }
  0x17   : > { %1195 = vmatpush1.bf16.msra.mxu1 %v2474_v11  ;;  %1153 = vmatprep.subr.bf16.mxu0 %v2481_v12  ;;  %v2597_v31 = vld [vmem:[%s3435_s2 + $0x100] ss:$8 sps:$4 sm:$0xff]   ;;  %v2609_v33 = vld [vmem:[%s3435_s2 + $0x1f4] ss:$8 sps:$4 sm:$0xff]   ;;  %v2614_v34 = vld [vmem:[%s3435_s2 + $0xf0] ss:$8 sps:$4 sm:$0xff]  }
  0x18   : > { %1196 = vmatprep.subr.bf16.mxu1 %v2488_v13  ;;  %v2619_v35 = vld [vmem:[%s3435_s2 + $0x1f0] ss:$8 sps:$4 sm:$0xff]   ;;  %s3679_s23 = smov (!%p300_p4, %s2338_s23), 1  ;;  %v2629_v36 = vld [vmem:[%s3435_s2 + $0xe4] ss:$8 sps:$4 sm:$0xff]   ;;  %vm1134_vm1 = vcmask 7168  }
  0x19   : > { %v2636_v37 = vld [vmem:[%s3435_s2 + $0x1e4] ss:$8 sps:$4 sm:$0xff]   ;;  %v2641_v38 = vld [vmem:[%s3435_s2 + $0xe0] ss:$8 sps:$4 sm:$0xff]   ;;  %s2100_s17 = smul.u32 144, %s3679_s23  ;;  %vm1363_vm2 = vcmask 261120  }
  0x1a   : > { %1154 = vmatpush1.bf16.msra.mxu0 %v2493_v14  ;;  %v2649_v39 = vld [vmem:[%s3435_s2 + $0x1e0] ss:$8 sps:$4 sm:$0xff]   ;;  %v2654_v40 = vld [vmem:[%s3435_s2 + $0xd4] ss:$8 sps:$4 sm:$0xff]   ;;  %v2666_v42 = vld [vmem:[%s3435_s2 + $0xd0] ss:$8 sps:$4 sm:$0xff]  }
  0x1b   : > { %1197 = vmatpush1.bf16.msra.mxu1 %v2500_v15  ;;  %1155 = vmatprep.subr.bf16.mxu0 %v2505_v16  ;;  %v2661_v41 = vld [vmem:[%s3435_s2 + $0x1d4] ss:$8 sps:$4 sm:$0xff]   ;;  %v2671_v43 = vld [vmem:[%s3435_s2 + $0x1d0] ss:$8 sps:$4 sm:$0xff]   ;;  %s2676_s9 = scalar_lea.vmem %s3433_s0, %s2100_s17  ;;  %v2683_v44 = vld [vmem:[%s3435_s2 + $0xc4] ss:$8 sps:$4 sm:$0xff]  }
  0x1c   : > { %1198 = vmatprep.subr.bf16.mxu1 %v2512_v17  ;;  %v2690_v45 = vld [vmem:[%s3435_s2 + $0x1c4] ss:$8 sps:$4 sm:$0xff]   ;;  %v472_v47 = vld [vmem:[%s2676_s9 + $0x50] sm:$0xff]  ;;  %v465_v48 = vld [vmem:[%s2676_s9 + $0x18] sm:$0xff]  ;;  %s2101_s12 = smul.u32 72, %s3679_s23  ;;  %vm1614_vm3 = vcmask 1046528  }
  0x1d   : > { %3519 = vst [vmem:[#allocation4_spill] sm:$0xff] %v2690_v45  ;;  %v463_v46 = vld [vmem:[%s2676_s9 + $0x8] sm:$0xff]  ;;  %v474_v49 = vld [vmem:[%s2676_s9 + $0x60] sm:$0xff]  ;;  %v2711_v52 = vld [vmem:[%s3435_s2 + $0xb4] ss:$8 sps:$4 sm:$0xff]   ;;  %vm1638_vm4 = vcmask 1045504  }
  0x1e   : > { %1156 = vmatpush1.bf16.msra.mxu0 %v2517_v18  ;;  %v2701_v50 = vld [vmem:[%s3435_s2 + $0xc0] ss:$8 sps:$4 sm:$0xff]   ;;  %v481_v53 = vpack.c.bf16 %v472_v47, %v463_v46  ;;  %v483_v54 = vpack.c.bf16 %v474_v49, %v465_v48  ;;  %v2718_v55 = vld [vmem:[%s3435_s2 + $0x1b4] ss:$8 sps:$4 sm:$0xff]   ;;  %v2723_v56 = vld [vmem:[%s3435_s2 + $0xb0] ss:$8 sps:$4 sm:$0xff]   ;;  %s3208_s26 = scalar_lea.vmem %s3434_s1, %s2101_s12 }
  0x1f   : > { %1199 = vmatpush1.bf16.msra.mxu1 %v2522_v19  ;;  %1157 = vmatprep.subr.bf16.mxu0 %v2529_v20  ;;  %v2706_v51 = vld [vmem:[%s3435_s2 + $0x1c0] ss:$8 sps:$4 sm:$0xff]   ;;  %3521 = vst [vmem:[#allocation6_spill] sm:$0xff] %v2718_v55  ;;  %v2728_v57 = vld [vmem:[%s3435_s2 + $0x1b0] ss:$8 sps:$4 sm:$0xff]   ;;  %s2350_s27 = smov 64  }
  0x20   : > { %1200 = vmatprep.subr.bf16.mxu1 %v2536_v21  ;;  %3520 = vst [vmem:[#allocation5_spill] sm:$0xff] %v2706_v51  ;;  %1179 = vmatprep.mubr.bf16.mxu0 %v481_v53  ;;  %3522 = vst [vmem:[#allocation7_spill] sm:$0xff] %v2728_v57  ;;  %v2735_v58 = vld [vmem:[%s3435_s2 + $0xa4] ss:$8 sps:$4 sm:$0xff]   ;;  %v2747_v60 = vld [vmem:[%s3435_s2 + $0xa0] ss:$8 sps:$4 sm:$0xff]  }
  0x21   : > { %1222 = vmatprep.mubr.bf16.mxu1 %v483_v54  ;;  %3523 = vst [vmem:[#allocation8_spill] sm:$0xff] %v2735_v58  ;;  %v2742_v59 = vld [vmem:[%s3435_s2 + $0x1a4] ss:$8 sps:$4 sm:$0xff]   ;;  %3525 = vst [vmem:[#allocation10_spill] sm:$0xff] %v2747_v60  ;;  %v2752_v61 = vld [vmem:[%s3435_s2 + $0x1a0] ss:$8 sps:$4 sm:$0xff]  }
  0x22   : > { %1158 = vmatpush1.bf16.msra.mxu0 %v2541_v22  ;;  %3524 = vst [vmem:[#allocation9_spill] sm:$0xff] %v2742_v59  ;;  %3526 = vst [vmem:[#allocation11_spill] sm:$0xff] %v2752_v61  ;;  %v2759_v62 = vld [vmem:[%s3435_s2 + $0x94] ss:$8 sps:$4 sm:$0xff]   ;;  %v2771_v46 = vld [vmem:[%s3435_s2 + $0x90] ss:$8 sps:$4 sm:$0xff]  }
  0x23   : > { %1201 = vmatpush1.bf16.msra.mxu1 %v2548_v23  ;;  %1159 = vmatprep.subr.bf16.mxu0 %v2553_v24  ;;  %3527 = vst [vmem:[#allocation12_spill] sm:$0xff] %v2759_v62  ;;  %v2766_v63 = vld [vmem:[%s3435_s2 + $0x194] ss:$8 sps:$4 sm:$0xff]   ;;  %3529 = vst [vmem:[#allocation14_spill] sm:$0xff] %v2771_v46  ;;  %v2776_v47 = vld [vmem:[%s3435_s2 + $0x190] ss:$8 sps:$4 sm:$0xff]  }
  0x24   : > { %1202 = vmatprep.subr.bf16.mxu1 %v2560_v25  ;;  %3528 = vst [vmem:[#allocation13_spill] sm:$0xff] %v2766_v63  ;;  %3530 = vst [vmem:[#allocation15_spill] sm:$0xff] %v2776_v47  ;;  %v2783_v48 = vld [vmem:[%s3435_s2 + $0x84] ss:$8 sps:$4 sm:$0xff]   ;;  %v2795_v53 = vld [vmem:[%s3435_s2 + $0x80] ss:$8 sps:$4 sm:$0xff]  }
  0x25   : > { %3531 = vst [vmem:[#allocation16_spill] sm:$0xff] %v2783_v48  ;;  %v2790_v49 = vld [vmem:[%s3435_s2 + $0x184] ss:$8 sps:$4 sm:$0xff]   ;;  %3533 = vst [vmem:[#allocation18_spill] sm:$0xff] %v2795_v53  ;;  %v2800_v54 = vld [vmem:[%s3435_s2 + $0x180] ss:$8 sps:$4 sm:$0xff]  }
  0x26   : > { %1160 = vmatpush1.bf16.msra.mxu0 %v2565_v26  ;;  %3532 = vst [vmem:[#allocation17_spill] sm:$0xff] %v2790_v49  ;;  %3534 = vst [vmem:[#allocation19_spill] sm:$0xff] %v2800_v54  ;;  %vm1603_vm5 = vcmask 257024   ;;  %vm1662_vm6 = vcmask 1044480   ;;  %s2351_s28 = smov 32   ;;  %vm1688_vm7 = vcmask 1043456  }
  0x27   : > { %1203 = vmatpush1.bf16.msra.mxu1 %v2570_v27  ;;  %1161 = vmatprep.subr.bf16.mxu0 %v2577_v28  ;;  %s330_s10 = sld [smem:[#allocation3]]  ;;  %s2099_s11 = sshll.u32 %s3679_s23, 4 }
  0x28   : > { %1204 = vmatprep.subr.bf16.mxu1 %v2584_v29  ;;  %s327_s14 = scalar_lea.vmem %s3439_s6, %s2099_s11 }
  0x2a   : > { %1162 = vmatpush1.bf16.msra.mxu0 %v2589_v30 }
  0x2b   : > { %1205 = vmatpush1.bf16.msra.mxu1 %v2597_v31  ;;  %1163 = vmatprep.subr.bf16.mxu0 %v2602_v32 }
  0x2c   : > { %1206 = vmatprep.subr.bf16.mxu1 %v2609_v33 }
  0x2e   : > { %1164 = vmatpush2.bf16.msra.mxu0 %v2614_v34 }
  0x2f   : > { %1207 = vmatpush2.bf16.msra.mxu1 %v2619_v35  ;;  %1165 = vmatprep.subr.bf16.mxu0 %v2629_v36 }
  0x30   : > { %1208 = vmatprep.subr.bf16.mxu1 %v2636_v37 }
  0x32   : > { %1166 = vmatpush2.bf16.msra.mxu0 %v2641_v38 }
  0x33   : > { %1209 = vmatpush2.bf16.msra.mxu1 %v2649_v39  ;;  %1167 = vmatprep.subr.bf16.mxu0 %v2654_v40 }
  0x34   : > { %1210 = vmatprep.subr.bf16.mxu1 %v2661_v41 }
  0x36   : > { %1168 = vmatpush2.bf16.msra.mxu0 %v2666_v42 }
  0x37   : > { %1211 = vmatpush2.bf16.msra.mxu1 %v2671_v43  ;;  %1169 = vmatprep.subr.bf16.mxu0 %v2683_v44 }
  0x38   : > { %1212 = vmatprep.subr.bf16.mxu1 %v2690_v45  ;;  %v1368_v45 = vld [vmem:[%s3208_s26 + $0x8] sm:$0xff] }
  0x3a   : > { %1170 = vmatpush2.bf16.msra.mxu0 %v2701_v50 }
  0x3b   : > { %1213 = vmatpush2.bf16.msra.mxu1 %v2706_v51  ;;  %1171 = vmatprep.subr.bf16.mxu0 %v2711_v52 }
  0x3c   : > { %1214 = vmatprep.subr.bf16.mxu1 %v2718_v55  ;;  %v2818_v55 = vld [vmem:[%s3435_s2 + $0x374] ss:$8 sps:$4 sm:$0xff]  }
  0x3d   : > { %3536 = vst [vmem:[#allocation21_spill] sm:$0xff] %v2818_v55 }
  0x3e   : > { %1172 = vmatpush2.bf16.msra.mxu0 %v2723_v56 }
  0x3f   : > { %1215 = vmatpush2.bf16.msra.mxu1 %v2728_v57  ;;  %1173 = vmatprep.subr.bf16.mxu0 %v2735_v58  ;;  %v464_v57 = vld [vmem:[%s2676_s9 + $0x10] sm:$0xff] }
  0x40   : > { %1216 = vmatprep.subr.bf16.mxu1 %v2742_v59  ;;  %v471_v59 = vld [vmem:[%s2676_s9 + $0x48] sm:$0xff] }
  0x42   : > { %1174 = vmatpush2.bf16.msra.mxu0 %v2747_v60 }
  0x43   : > { %1217 = vmatpush2.bf16.msra.mxu1 %v2752_v61  ;;  %1175 = vmatprep.subr.bf16.mxu0 %v2759_v62  ;;  %v462_v61 = vld [vmem:[%s2676_s9] sm:$0xff]  ;;  %v473_v62 = vld [vmem:[%s2676_s9 + $0x58] sm:$0xff] }
  0x44   : > { %1218 = vmatprep.subr.bf16.mxu1 %v2766_v63  ;;  %v2811_v63 = vld [vmem:[%s3435_s2 + $0x274] ss:$8 sps:$4 sm:$0xff]   ;;  %v480_v60 = vpack.c.bf16 %v471_v59, %v462_v61  ;;  %v482_v51 = vpack.c.bf16 %v473_v62, %v464_v57  ;;  %v2842_v57 = vld [vmem:[%s3435_s2 + $0x364] ss:$8 sps:$4 sm:$0xff]   ;;  %v2847_v59 = vld [vmem:[%s3435_s2 + $0x260] ss:$8 sps:$4 sm:$0xff]  }
  0x45   : > { %3535 = vst [vmem:[#allocation20_spill] sm:$0xff] %v2811_v63  ;;  %3540 = vst [vmem:[#allocation25_spill] sm:$0xff] %v2842_v57  ;;  %v2852_v61 = vld [vmem:[%s3435_s2 + $0x360] ss:$8 sps:$4 sm:$0xff]   ;;  %v2859_v62 = vld [vmem:[%s3435_s2 + $0x254] ss:$8 sps:$4 sm:$0xff]  }
  0x46   : > { %1176 = vmatpush2.bf16.msra.mxu0 %v2771_v46  ;;  %v2828_v46 = vld [vmem:[%s3435_s2 + $0x370] ss:$8 sps:$4 sm:$0xff]   ;;  %3541 = vst [vmem:[#allocation26_spill] sm:$0xff] %v2847_v59  ;;  %3542 = vst [vmem:[#allocation27_spill] sm:$0xff] %v2852_v61 }
  0x47   : > { %1219 = vmatpush2.bf16.msra.mxu1 %v2776_v47  ;;  %1177 = vmatprep.subr.bf16.mxu0 %v2783_v48  ;;  %v2823_v47 = vld [vmem:[%s3435_s2 + $0x270] ss:$8 sps:$4 sm:$0xff]   ;;  %3538 = vst [vmem:[#allocation23_spill] sm:$0xff] %v2828_v46  ;;  %3543 = vst [vmem:[#allocation28_spill] sm:$0xff] %v2859_v62 }
  0x48   : > { %1220 = vmatprep.subr.bf16.mxu1 %v2790_v49  ;;  %3537 = vst [vmem:[#allocation22_spill] sm:$0xff] %v2823_v47  ;;  %v2835_v49 = vld [vmem:[%s3435_s2 + $0x264] ss:$8 sps:$4 sm:$0xff]   ;;  %v477_v48 = vld [vmem:[%s2676_s9 + $0x78] sm:$0xff] }
  0x49   : > { %3539 = vst [vmem:[#allocation24_spill] sm:$0xff] %v2835_v49 }
  0x4a   : > { %1178 = vmatpush2.bf16.msra.mxu0 %v2795_v53  ;;  %v468_v53 = vld [vmem:[%s2676_s9 + $0x30] sm:$0xff] }
  0x4b   : > { %1221 = vmatpush2.bf16.msra.mxu1 %v2800_v54  ;;  %1233 = vmatprep.subr.bf16.mxu0 %v2811_v63  ;;  %v469_v54 = vld [vmem:[%s2676_s9 + $0x38] sm:$0xff]  ;;  %v478_v63 = vld [vmem:[%s2676_s9 + $0x80] sm:$0xff] }
  0x4c   : > { %1276 = vmatprep.subr.bf16.mxu1 %v2818_v55  ;;  %v2890_v55 = vld [vmem:[%s3435_s2 + $0x344] ss:$8 sps:$4 sm:$0xff]  }
  0x4d   : > { %1180 = vmatmul.mubr.bf16.vlgmr.msra.gmra.mxu0 %v480_v60  ;;  %v2871_v60 = vld [vmem:[%s3435_s2 + $0x250] ss:$8 sps:$4 sm:$0xff]   ;;  %3548 = vst [vmem:[#allocation33_spill] sm:$0xff] %v2890_v55 }
  0x4e   : > { %1223 = vmatmul.mubr.bf16.vlgmr.msra.gmra.mxu1 %v482_v51  ;;  %1234 = vmatpush1.bf16.msra.mxu0 %v2823_v47  ;;  %v2866_v51 = vld [vmem:[%s3435_s2 + $0x354] ss:$8 sps:$4 sm:$0xff]   ;;  %3545 = vst [vmem:[#allocation30_spill] sm:$0xff] %v2871_v60  ;;  %v2989_v47 = vld [vmem:[%s3435_s2 + $0x304] ss:$8 sps:$4 sm:$0xff]  }
  0x4f   : > { %1277 = vmatpush1.bf16.msra.mxu1 %v2828_v46  ;;  %1235 = vmatprep.subr.bf16.mxu0 %v2835_v49  ;;  %3544 = vst [vmem:[#allocation29_spill] sm:$0xff] %v2866_v51  ;;  %v2876_v46 = vld [vmem:[%s3435_s2 + $0x350] ss:$8 sps:$4 sm:$0xff]   ;;  %v2984_v49 = vld [vmem:[%s3435_s2 + $0x204] ss:$8 sps:$4 sm:$0xff]   ;;  %3564 = vst [vmem:[#allocation49_spill] sm:$0xff] %v2989_v47 }
  0x50   : > { %1278 = vmatprep.subr.bf16.mxu1 %v2842_v57  ;;  %3546 = vst [vmem:[#allocation31_spill] sm:$0xff] %v2876_v46  ;;  %v2883_v57 = vld [vmem:[%s3435_s2 + $0x244] ss:$8 sps:$4 sm:$0xff]   ;;  %3563 = vst [vmem:[#allocation48_spill] sm:$0xff] %v2984_v49 }
  0x51   : > { %3547 = vst [vmem:[#allocation32_spill] sm:$0xff] %v2883_v57 }
  0x52   : > { %1236 = vmatpush1.bf16.msra.mxu0 %v2847_v59  ;;  %v2895_v59 = vld [vmem:[%s3435_s2 + $0x240] ss:$8 sps:$4 sm:$0xff]  }
  0x53   : > { %1279 = vmatpush1.bf16.msra.mxu1 %v2852_v61  ;;  %1237 = vmatprep.subr.bf16.mxu0 %v2859_v62  ;;  %3549 = vst [vmem:[#allocation34_spill] sm:$0xff] %v2895_v59  ;;  %v2900_v61 = vld [vmem:[%s3435_s2 + $0x340] ss:$8 sps:$4 sm:$0xff]   ;;  %v2914_v62 = vld [vmem:[%s3435_s2 + $0x334] ss:$8 sps:$4 sm:$0xff]  }
  0x54   : > { %1280 = vmatprep.subr.bf16.mxu1 %v2866_v51  ;;  %3550 = vst [vmem:[#allocation35_spill] sm:$0xff] %v2900_v61  ;;  %v2907_v51 = vld [vmem:[%s3435_s2 + $0x234] ss:$8 sps:$4 sm:$0xff]   ;;  %3552 = vst [vmem:[#allocation37_spill] sm:$0xff] %v2914_v62 }
  0x55   : > { %3551 = vst [vmem:[#allocation36_spill] sm:$0xff] %v2907_v51 }
  0x56   : > { %1238 = vmatpush1.bf16.msra.mxu0 %v2871_v60  ;;  %v2919_v60 = vld [vmem:[%s3435_s2 + $0x230] ss:$8 sps:$4 sm:$0xff]  }
  0x57   : > { %1281 = vmatpush1.bf16.msra.mxu1 %v2876_v46  ;;  %1239 = vmatprep.subr.bf16.mxu0 %v2883_v57  ;;  %3553 = vst [vmem:[#allocation38_spill] sm:$0xff] %v2919_v60  ;;  %v2924_v46 = vld [vmem:[%s3435_s2 + $0x330] ss:$8 sps:$4 sm:$0xff]   ;;  %v2938_v57 = vld [vmem:[%s3435_s2 + $0x324] ss:$8 sps:$4 sm:$0xff]  }
  0x58   : > { %1282 = vmatprep.subr.bf16.mxu1 %v2890_v55  ;;  %3554 = vst [vmem:[#allocation39_spill] sm:$0xff] %v2924_v46  ;;  %v2931_v55 = vld [vmem:[%s3435_s2 + $0x224] ss:$8 sps:$4 sm:$0xff]   ;;  %3556 = vst [vmem:[#allocation41_spill] sm:$0xff] %v2938_v57 }
  0x59   : > { %3555 = vst [vmem:[#allocation40_spill] sm:$0xff] %v2931_v55 }
  0x5a   : > { %1240 = vmatpush1.bf16.msra.mxu0 %v2895_v59  ;;  %v2948_v59 = vld [vmem:[%s3435_s2 + $0x320] ss:$8 sps:$4 sm:$0xff]  }
  0x5b   : > { %1283 = vmatpush1.bf16.msra.mxu1 %v2900_v61  ;;  %1241 = vmatprep.subr.bf16.mxu0 %v2907_v51  ;;  %v2943_v61 = vld [vmem:[%s3435_s2 + $0x220] ss:$8 sps:$4 sm:$0xff]   ;;  %3558 = vst [vmem:[#allocation43_spill] sm:$0xff] %v2948_v59  ;;  %v2962_v51 = vld [vmem:[%s3435_s2 + $0x314] ss:$8 sps:$4 sm:$0xff]  }
  0x5c   : > { %1284 = vmatprep.subr.bf16.mxu1 %v2914_v62  ;;  %3557 = vst [vmem:[#allocation42_spill] sm:$0xff] %v2943_v61  ;;  %v2955_v62 = vld [vmem:[%s3435_s2 + $0x214] ss:$8 sps:$4 sm:$0xff]   ;;  %3560 = vst [vmem:[#allocation45_spill] sm:$0xff] %v2962_v51 }
  0x5d   : > { %3559 = vst [vmem:[#allocation44_spill] sm:$0xff] %v2955_v62 }
  0x5e   : > { %1242 = vmatpush1.bf16.msra.mxu0 %v2919_v60  ;;  %v2967_v60 = vld [vmem:[%s3435_s2 + $0x210] ss:$8 sps:$4 sm:$0xff]  }
  0x5f   : > { %1285 = vmatpush1.bf16.msra.mxu1 %v2924_v46  ;;  %1243 = vmatprep.subr.bf16.mxu0 %v2931_v55  ;;  %3561 = vst [vmem:[#allocation46_spill] sm:$0xff] %v2967_v60  ;;  %v2972_v46 = vld [vmem:[%s3435_s2 + $0x310] ss:$8 sps:$4 sm:$0xff]  }
  0x60   : > { %1286 = vmatprep.subr.bf16.mxu1 %v2938_v57  ;;  %3562 = vst [vmem:[#allocation47_spill] sm:$0xff] %v2972_v46  ;;  %v467_v57 = vld [vmem:[%s2676_s9 + $0x28] sm:$0xff]  ;;  %v476_v55 = vld [vmem:[%s2676_s9 + $0x70] sm:$0xff] }
  0x62   : > { %1244 = vmatpush1.bf16.msra.mxu0 %v2943_v61  ;;  %v485_v61 = vpack.c.bf16 %v476_v55, %v467_v57  ;;  %v3009_v55 = vld [vmem:[%s3435_s2 + $0x2f4] ss:$8 sps:$4 sm:$0xff]   ;;  %v3026_v57 = vld [vmem:[%s3435_s2 + $0x3f0] ss:$8 sps:$4 sm:$0xff]  }
  0x63   : > { %1287 = vmatpush1.bf16.msra.mxu1 %v2948_v59  ;;  %1245 = vmatprep.subr.bf16.mxu0 %v2955_v62  ;;  %v487_v59 = vpack.c.bf16 %v478_v63, %v469_v54  ;;  %v3002_v62 = vld [vmem:[%s3435_s2 + $0x300] ss:$8 sps:$4 sm:$0xff]   ;;  %3567 = vst [vmem:[#allocation52_spill] sm:$0xff] %v3009_v55  ;;  %v3014_v63 = vld [vmem:[%s3435_s2 + $0x3f4] ss:$8 sps:$4 sm:$0xff]   ;;  %3570 = vst [vmem:[#allocation55_spill] sm:$0xff] %v3026_v57 }
  0x64   : > { %1288 = vmatprep.subr.bf16.mxu1 %v2962_v51  ;;  %1265 = vmatprep.mubr.bf16.mxu0 %v485_v61  ;;  %v2997_v51 = vld [vmem:[%s3435_s2 + $0x200] ss:$8 sps:$4 sm:$0xff]   ;;  %3566 = vst [vmem:[#allocation51_spill] sm:$0xff] %v3002_v62  ;;  %3568 = vst [vmem:[#allocation53_spill] sm:$0xff] %v3014_v63  ;;  %v3021_v54 = vld [vmem:[%s3435_s2 + $0x2f0] ss:$8 sps:$4 sm:$0xff]  }
  0x65   : > { %3565 = vst [vmem:[#allocation50_spill] sm:$0xff] %v2997_v51  ;;  %1308 = vmatprep.mubr.bf16.mxu1 %v487_v59  ;;  %3569 = vst [vmem:[#allocation54_spill] sm:$0xff] %v3021_v54  ;;  %v3033_v59 = vld [vmem:[%s3435_s2 + $0x2e4] ss:$8 sps:$4 sm:$0xff]  }
  0x66   : > { %1246 = vmatpush1.bf16.msra.mxu0 %v2967_v60  ;;  %3571 = vst [vmem:[#allocation56_spill] sm:$0xff] %v3033_v59  ;;  %v3038_v61 = vld [vmem:[%s3435_s2 + $0x3e4] ss:$8 sps:$4 sm:$0xff]  }
  0x67   : > { %1289 = vmatpush1.bf16.msra.mxu1 %v2972_v46  ;;  %1247 = vmatprep.subr.bf16.mxu0 %v2984_v49  ;;  %3572 = vst [vmem:[#allocation57_spill] sm:$0xff] %v3038_v61  ;;  %v466_v49 = vld [vmem:[%s2676_s9 + $0x20] sm:$0xff]  ;;  %v475_v60 = vld [vmem:[%s2676_s9 + $0x68] sm:$0xff] }
  0x68   : > { %1290 = vmatprep.subr.bf16.mxu1 %v2989_v47  ;;  %v3057_v47 = vld [vmem:[%s3435_s2 + $0x2d4] ss:$8 sps:$4 sm:$0xff]  }
  0x69   : > { %3575 = vst [vmem:[#allocation60_spill] sm:$0xff] %v3057_v47 }
  0x6a   : > { %1248 = vmatpush1.bf16.msra.mxu0 %v2997_v51 }
  0x6b   : > { %1291 = vmatpush1.bf16.msra.mxu1 %v3002_v62  ;;  %1249 = vmatprep.subr.bf16.mxu0 %v3009_v55  ;;  %v3045_v62 = vld [vmem:[%s3435_s2 + $0x2e0] ss:$8 sps:$4 sm:$0xff]   ;;  %v3513_v55 = vmov 0  }
  0x6c   : > { %1292 = vmatprep.subr.bf16.mxu1 %v3014_v63  ;;  %3573 = vst [vmem:[#allocation58_spill] sm:$0xff] %v3045_v62  ;;  %v3050_v63 = vld [vmem:[%s3435_s2 + $0x3e0] ss:$8 sps:$4 sm:$0xff]   ;;  %v1140_v51 = vsel %vm1138_vm0, 65535, %v3513_v55 }
  0x6d   : > { %3574 = vst [vmem:[#allocation59_spill] sm:$0xff] %v3050_v63 }
  0x6e   : > { %1250 = vmatpush2.bf16.msra.mxu0 %v3021_v54  ;;  %v461_v54 = vld [vmem:[%s3435_s2 + $0x400] sm:$0x11] }
  0x6f   : > { %1293 = vmatpush2.bf16.msra.mxu1 %v3026_v57  ;;  %1251 = vmatprep.subr.bf16.mxu0 %v3033_v59  ;;  %v3062_v57 = vld [vmem:[%s3435_s2 + $0x3d4] ss:$8 sps:$4 sm:$0xff]   ;;  %v3069_v59 = vld [vmem:[%s3435_s2 + $0x2d0] ss:$8 sps:$4 sm:$0xff]   ;;  %v2093_v46 = vcombine.high %v461_v54, %v461_v54  ;;  %v2092_v58 = vcombine.low %v461_v54, %v461_v54 }
  0x70   : > { %1294 = vmatprep.subr.bf16.mxu1 %v3038_v61  ;;  %3576 = vst [vmem:[#allocation61_spill] sm:$0xff] %v3062_v57  ;;  %3577 = vst [vmem:[#allocation62_spill] sm:$0xff] %v3069_v59  ;;  %v3074_v61 = vld [vmem:[%s3435_s2 + $0x3d0] ss:$8 sps:$4 sm:$0xff]  }
  0x71   : > { %3578 = vst [vmem:[#allocation63_spill] sm:$0xff] %v3074_v61  ;;  %v3212_v55 = vand.u32 %v2093_v46, %v1140_v51  ;;  %v3217_v54 = vand.u32 %v2092_v58, %v1140_v51  ;;  %v470_v46 = vld [vmem:[%s2676_s9 + $0x40] sm:$0xff] }
  0x72   : > { %1252 = vmatpush2.bf16.msra.mxu0 %v3045_v62  ;;  %v3081_v62 = vld [vmem:[%s3435_s2 + $0x2c4] ss:$8 sps:$4 sm:$0xff]  }
  0x73   : > { %1295 = vmatpush2.bf16.msra.mxu1 %v3050_v63  ;;  %1253 = vmatprep.subr.bf16.mxu0 %v3057_v47  ;;  %3579 = vst [vmem:[#allocation64_spill] sm:$0xff] %v3081_v62  ;;  %v3086_v63 = vld [vmem:[%s3435_s2 + $0x3c4] ss:$8 sps:$4 sm:$0xff]   ;;  %v3093_v47 = vld [vmem:[%s3435_s2 + $0x2c0] ss:$8 sps:$4 sm:$0xff]  }
  0x74   : > { %1296 = vmatprep.subr.bf16.mxu1 %v3062_v57  ;;  %3580 = vst [vmem:[#allocation65_spill] sm:$0xff] %v3086_v63  ;;  %3581 = vst [vmem:[#allocation66_spill] sm:$0xff] %v3093_v47  ;;  %v3098_v57 = vld [vmem:[%s3435_s2 + $0x3c0] ss:$8 sps:$4 sm:$0xff]  }
  0x75   : > { %3582 = vst [vmem:[#allocation67_spill] sm:$0xff] %v3098_v57  ;;  %v3638_v51 = vld [vmem:[#allocation48_spill] sm:$0xff] }
  0x76   : > { %1254 = vmatpush2.bf16.msra.mxu0 %v3069_v59  ;;  %v3105_v59 = vld [vmem:[%s3435_s2 + $0x2b4] ss:$8 sps:$4 sm:$0xff]  }
  0x77   : > { %1297 = vmatpush2.bf16.msra.mxu1 %v3074_v61  ;;  %1255 = vmatprep.subr.bf16.mxu0 %v3081_v62  ;;  %3583 = vst [vmem:[#allocation68_spill] sm:$0xff] %v3105_v59  ;;  %v3110_v61 = vld [vmem:[%s3435_s2 + $0x3b4] ss:$8 sps:$4 sm:$0xff]   ;;  %v3117_v62 = vld [vmem:[%s3435_s2 + $0x2b0] ss:$8 sps:$4 sm:$0xff]  }
  0x78   : > { %1298 = vmatprep.subr.bf16.mxu1 %v3086_v63  ;;  %3584 = vst [vmem:[#allocation69_spill] sm:$0xff] %v3110_v61  ;;  %3585 = vst [vmem:[#allocation70_spill] sm:$0xff] %v3117_v62  ;;  %v3122_v63 = vld [vmem:[%s3435_s2 + $0x3b0] ss:$8 sps:$4 sm:$0xff]  }
  0x79   : > { %3586 = vst [vmem:[#allocation71_spill] sm:$0xff] %v3122_v63 }
  0x7a   : > { %1256 = vmatpush2.bf16.msra.mxu0 %v3093_v47  ;;  %v3129_v47 = vld [vmem:[%s3435_s2 + $0x2a4] ss:$8 sps:$4 sm:$0xff]  }
  0x7b   : > { %1299 = vmatpush2.bf16.msra.mxu1 %v3098_v57  ;;  %1257 = vmatprep.subr.bf16.mxu0 %v3105_v59  ;;  %3587 = vst [vmem:[#allocation72_spill] sm:$0xff] %v3129_v47  ;;  %v3134_v57 = vld [vmem:[%s3435_s2 + $0x3a4] ss:$8 sps:$4 sm:$0xff]   ;;  %v3141_v59 = vld [vmem:[%s3435_s2 + $0x2a0] ss:$8 sps:$4 sm:$0xff]  }
  0x7c   : > { %1300 = vmatprep.subr.bf16.mxu1 %v3110_v61  ;;  %3588 = vst [vmem:[#allocation73_spill] sm:$0xff] %v3134_v57  ;;  %3589 = vst [vmem:[#allocation74_spill] sm:$0xff] %v3141_v59  ;;  %v3146_v61 = vld [vmem:[%s3435_s2 + $0x3a0] ss:$8 sps:$4 sm:$0xff]  }
  0x7d   : > { %3590 = vst [vmem:[#allocation75_spill] sm:$0xff] %v3146_v61 }
  0x7e   : > { %1258 = vmatpush2.bf16.msra.mxu0 %v3117_v62  ;;  %v3153_v62 = vld [vmem:[%s3435_s2 + $0x294] ss:$8 sps:$4 sm:$0xff]  }
  0x7f   : > { %1301 = vmatpush2.bf16.msra.mxu1 %v3122_v63  ;;  %1259 = vmatprep.subr.bf16.mxu0 %v3129_v47  ;;  %3591 = vst [vmem:[#allocation76_spill] sm:$0xff] %v3153_v62  ;;  %v3158_v63 = vld [vmem:[%s3435_s2 + $0x394] ss:$8 sps:$4 sm:$0xff]   ;;  %v3173_v47 = vld [vmem:[%s3435_s2 + $0x390] ss:$8 sps:$4 sm:$0xff]  }
  0x80   : > { %1302 = vmatprep.subr.bf16.mxu1 %v3134_v57  ;;  %3592 = vst [vmem:[#allocation77_spill] sm:$0xff] %v3158_v63  ;;  %v3168_v57 = vld [vmem:[%s3435_s2 + $0x290] ss:$8 sps:$4 sm:$0xff]   ;;  %3594 = vst [vmem:[#allocation79_spill] sm:$0xff] %v3173_v47 }
  0x81   : > { %3593 = vst [vmem:[#allocation78_spill] sm:$0xff] %v3168_v57 }
  0x82   : > { %1260 = vmatpush2.bf16.msra.mxu0 %v3141_v59  ;;  %v3186_v59 = vld [vmem:[%s3435_s2 + $0x384] ss:$8 sps:$4 sm:$0xff]  }
  0x83   : > { %1303 = vmatpush2.bf16.msra.mxu1 %v3146_v61  ;;  %1261 = vmatprep.subr.bf16.mxu0 %v3153_v62  ;;  %v3181_v61 = vld [vmem:[%s3435_s2 + $0x284] ss:$8 sps:$4 sm:$0xff]   ;;  %v3192_v62 = vld [vmem:[%s3435_s2 + $0x280] ss:$8 sps:$4 sm:$0xff]  }
  0x84   : > { %1304 = vmatprep.subr.bf16.mxu1 %v3158_v63  ;;  %3595 = vst [vmem:[#allocation80_spill] sm:$0xff] %v3181_v61  ;;  %v3197_v63 = vld [vmem:[%s3435_s2 + $0x380] ss:$8 sps:$4 sm:$0xff]  }
  0x86   : > { %1262 = vmatpush2.bf16.msra.mxu0 %v3168_v57  ;;  %v484_v57 = vpack.c.bf16 %v475_v60, %v466_v49  ;;  %v3596_v49 = vmov 0   ;;  %v3639_v60 = vld [vmem:[#allocation43_spill] sm:$0xff] }
  0x87   : > { %1305 = vmatpush2.bf16.msra.mxu1 %v3173_v47  ;;  %1263 = vmatprep.subr.bf16.mxu0 %v3181_v61  ;;  %v486_v47 = vpack.c.bf16 %v477_v48, %v468_v53  ;;  %v1377_v61 = vpack.c.bf16 %v1368_v45, %v1368_v45  ;;  %v479_v48 = vld [vmem:[%s2676_s9 + $0x88] sm:$0xff]  ;;  %v1370_v53 = vld [vmem:[%s3208_s26 + $0x18] sm:$0xff]  ;;  %s2349_s9 = smov 96  }
  0x88   : > { %1306 = vmatprep.subr.bf16.mxu1 %v3186_v59  ;;  %v488_v58 = vpack.c.bf16 %v479_v48, %v470_v46  ;;  %v3633_v45 = vld [vmem:[#allocation37_spill] sm:$0xff]  ;;  %v3642_v46 = vld [vmem:[#allocation52_spill] sm:$0xff]  ;;  %v3643_v48 = vld [vmem:[#allocation47_spill] sm:$0xff] }
  0x8a   : > { %1264 = vmatpush2.bf16.msra.mxu0 %v3192_v62 }
  0x8b   : > { %1307 = vmatpush2.bf16.msra.mxu1 %v3197_v63  ;;  %1333 = vmatprep.subr.bf16.mxu0 %v3212_v55 }
  0x8c   : > { %1388 = vmatprep.subr.bf16.mxu1 %v2413_v0  ;;  %v1379_v0 = vpack.c.bf16 %v1370_v53, %v1370_v53  ;;  %v3645_v53 = vld [vmem:[#allocation49_spill] sm:$0xff] }
  0x8d   : > { %1266 = vmatmul.mubr.bf16.vlgmr.msra.gmra.mxu0 %v484_v57  ;;  %v3640_v57 = vld [vmem:[#allocation50_spill] sm:$0xff] }
  0x8e   : > { %1309 = vmatmul.mubr.bf16.vlgmr.msra.gmra.mxu1 %v486_v47  ;;  %1334 = vmatpush1.bf16.msra.mxu0 %v3217_v54  ;;  %v3637_v47 = vld [vmem:[#allocation41_spill] sm:$0xff] }
  0x8f   : > { %1389 = vmatpush1.bf16.msra.mxu1 %v2424_v2  ;;  %1351 = vmatprep.mubr.bf16.mxu0 %v3596_v49  ;;  %v3598_v2 = vld [vmem:[#allocation8_spill] sm:$0xff] }
  0x90   : > { %1390 = vmatprep.subr.bf16.mxu1 %v2435_v4  ;;  %1429 = vmatprep.subr.bf16.mxu0 %v2418_v1  ;;  %v3597_v1 = vld [vmem:[#allocation4_spill] sm:$0xff]  ;;  %v3600_v4 = vld [vmem:[#allocation10_spill] sm:$0xff] }
  0x91   : > { %1420 = vmatprep.mubr.bf16.mxu1 %v1377_v61  ;;  %v3641_v61 = vld [vmem:[#allocation45_spill] sm:$0xff] }
  0x93   : > { %1391 = vmatpush1.bf16.msra.mxu1 %v2447_v6  ;;  %v3602_v6 = vld [vmem:[#allocation12_spill] sm:$0xff] }
  0x94   : > { %1392 = vmatprep.subr.bf16.mxu1 %v2459_v8  ;;  %v3604_v8 = vld [vmem:[#allocation14_spill] sm:$0xff] }
  0x95   : > { %2094 = vmatmul.mubr.msk.bf16.vlgmr.msra.gmra.mxu0 %vm1134_vm1, %v488_v58  ;;  %v3644_v58 = vld [vmem:[#allocation54_spill] sm:$0xff] }
  0x96   : > { %1430 = vmatpush1.bf16.msra.mxu0 %v2429_v3  ;;  %1461 = vmatprep.mubr.bf16.mxu0 %v1379_v0  ;;  %v3599_v3 = vld [vmem:[#allocation5_spill] sm:$0xff]  ;;  %v3646_v0 = vld [vmem:[#allocation56_spill] sm:$0xff] }
  0x97   : > { %1393 = vmatpush1.bf16.msra.mxu1 %v2469_v10  ;;  %1431 = vmatprep.subr.bf16.mxu0 %v2442_v5  ;;  %v3601_v5 = vld [vmem:[#allocation6_spill] sm:$0xff]  ;;  %v3605_v10 = vld [vmem:[#allocation9_spill] sm:$0xff] }
  0x98   : > { %1394 = vmatprep.subr.bf16.mxu1 %v2481_v12 }
  0x9a   : > { %1432 = vmatpush1.bf16.msra.mxu0 %v2453_v7  ;;  %v3603_v7 = vld [vmem:[#allocation7_spill] sm:$0xff] }
  0x9b   : > { %1395 = vmatpush1.bf16.msra.mxu1 %v2493_v14  ;;  %1433 = vmatprep.subr.bf16.mxu0 %v2464_v9  ;;  %v1367_v9 = vld [vmem:[%s3208_s26] sm:$0xff]  ;;  %v3607_v14 = vld [vmem:[#allocation11_spill] sm:$0xff] }
  0x9c   : > { %1396 = vmatprep.subr.bf16.mxu1 %v2505_v16  ;;  %v1376_v12 = vpack.c.bf16 %v1367_v9, %v1367_v9  ;;  %v3609_v16 = vld [vmem:[#allocation13_spill] sm:$0xff]  ;;  %v3655_v9 = vld [vmem:[#allocation59_spill] sm:$0xff] }
  0x9e   : > { %1434 = vmatpush1.bf16.msra.mxu0 %v2474_v11  ;;  %v3606_v11 = vld [vmem:[#allocation16_spill] sm:$0xff] }
  0x9f   : > { %1397 = vmatpush1.bf16.msra.mxu1 %v2517_v18  ;;  %1435 = vmatprep.subr.bf16.mxu0 %v2488_v13  ;;  %v1372_v13 = vld [vmem:[%s3208_s26 + $0x28] sm:$0xff] }
  0xa0   : > { %1398 = vmatprep.subr.bf16.mxu1 %v2529_v20  ;;  %v1381_v18 = vpack.c.bf16 %v1372_v13, %v1372_v13  ;;  %v3612_v20 = vld [vmem:[#allocation22_spill] sm:$0xff]  ;;  %v3659_v13 = vld [vmem:[#allocation63_spill] sm:$0xff] }
  0xa2   : > { %1436 = vmatpush1.bf16.msra.mxu0 %v2500_v15  ;;  %v3608_v15 = vld [vmem:[#allocation18_spill] sm:$0xff] }
  0xa3   : > { %1399 = vmatpush1.bf16.msra.mxu1 %v2541_v22  ;;  %1437 = vmatprep.subr.bf16.mxu0 %v2512_v17  ;;  %v3610_v17 = vld [vmem:[#allocation20_spill] sm:$0xff]  ;;  %v3613_v22 = vld [vmem:[#allocation17_spill] sm:$0xff] }
  0xa4   : > { %1400 = vmatprep.subr.bf16.mxu1 %v2553_v24 }
  0xa6   : > { %1438 = vmatpush1.bf16.msra.mxu0 %v2522_v19  ;;  %v3611_v19 = vld [vmem:[#allocation15_spill] sm:$0xff] }
  0xa7   : > { %1401 = vmatpush1.bf16.msra.mxu1 %v2565_v26  ;;  %1439 = vmatprep.subr.bf16.mxu0 %v2536_v21  ;;  %v1369_v21 = vld [vmem:[%s3208_s26 + $0x10] sm:$0xff]  ;;  %v3615_v26 = vld [vmem:[#allocation19_spill] sm:$0xff] }
  0xa8   : > { %1402 = vmatprep.subr.bf16.mxu1 %v2577_v28  ;;  %v1378_v24 = vpack.c.bf16 %v1369_v21, %v1369_v21  ;;  %v3617_v28 = vld [vmem:[#allocation21_spill] sm:$0xff]  ;;  %v3667_v21 = vld [vmem:[#allocation71_spill] sm:$0xff] }
  0xaa   : > { %1440 = vmatpush1.bf16.msra.mxu0 %v2548_v23  ;;  %v3614_v23 = vld [vmem:[#allocation24_spill] sm:$0xff] }
  0xab   : > { %1403 = vmatpush1.bf16.msra.mxu1 %v2589_v30  ;;  %1441 = vmatprep.subr.bf16.mxu0 %v2560_v25  ;;  %v1374_v25 = vld [vmem:[%s3208_s26 + $0x38] sm:$0xff] }
  0xac   : > { %1404 = vmatprep.subr.bf16.mxu1 %v2602_v32  ;;  %v1383_v30 = vpack.c.bf16 %v1374_v25, %v1374_v25  ;;  %v3620_v32 = vld [vmem:[#allocation30_spill] sm:$0xff]  ;;  %v3670_v25 = vld [vmem:[#allocation80_spill] sm:$0xff] }
  0xae   : > { %1442 = vmatpush1.bf16.msra.mxu0 %v2570_v27  ;;  %v3616_v27 = vld [vmem:[#allocation26_spill] sm:$0xff] }
  0xaf   : > { %1405 = vmatpush2.bf16.msra.mxu1 %v2614_v34  ;;  %1443 = vmatprep.subr.bf16.mxu0 %v2584_v29  ;;  %v3618_v29 = vld [vmem:[#allocation28_spill] sm:$0xff] }
  0xb0   : > { %1406 = vmatprep.subr.bf16.mxu1 %v2629_v36  ;;  %v3622_v34 = vld [vmem:[#allocation32_spill] sm:$0xff]  ;;  %v3624_v36 = vld [vmem:[#allocation34_spill] sm:$0xff] }
  0xb2   : > { %1444 = vmatpush1.bf16.msra.mxu0 %v2597_v31  ;;  %v3619_v31 = vld [vmem:[#allocation23_spill] sm:$0xff] }
  0xb3   : > { %1407 = vmatpush2.bf16.msra.mxu1 %v2641_v38  ;;  %1445 = vmatprep.subr.bf16.mxu0 %v2609_v33  ;;  %v3621_v33 = vld [vmem:[#allocation25_spill] sm:$0xff]  ;;  %v3626_v38 = vld [vmem:[#allocation36_spill] sm:$0xff] }
  0xb4   : > { %1408 = vmatprep.subr.bf16.mxu1 %v2654_v40  ;;  %v3628_v40 = vld [vmem:[#allocation38_spill] sm:$0xff] }
  0xb6   : > { %1446 = vmatpush2.bf16.msra.mxu0 %v2619_v35  ;;  %v3623_v35 = vld [vmem:[#allocation27_spill] sm:$0xff] }
  0xb7   : > { %1409 = vmatpush2.bf16.msra.mxu1 %v2666_v42  ;;  %1447 = vmatprep.subr.bf16.mxu0 %v2636_v37  ;;  %v3625_v37 = vld [vmem:[#allocation29_spill] sm:$0xff]  ;;  %v3630_v42 = vld [vmem:[#allocation40_spill] sm:$0xff] }
  0xb8   : > { %1410 = vmatprep.subr.bf16.mxu1 %v2683_v44  ;;  %v3632_v44 = vld [vmem:[#allocation42_spill] sm:$0xff] }
  0xba   : > { %1448 = vmatpush2.bf16.msra.mxu0 %v2649_v39  ;;  %v3627_v39 = vld [vmem:[#allocation31_spill] sm:$0xff] }
  0xbb   : > { %1411 = vmatpush2.bf16.msra.mxu1 %v2701_v50  ;;  %1449 = vmatprep.subr.bf16.mxu0 %v2661_v41  ;;  %v3629_v41 = vld [vmem:[#allocation33_spill] sm:$0xff]  ;;  %v3634_v50 = vld [vmem:[#allocation44_spill] sm:$0xff] }
  0xbc   : > { %1412 = vmatprep.subr.bf16.mxu1 %v2711_v52  ;;  %v3635_v52 = vld [vmem:[#allocation39_spill] sm:$0xff] }
  0xbe   : > { %1450 = vmatpush2.bf16.msra.mxu0 %v2671_v43  ;;  %v3631_v43 = vld [vmem:[#allocation35_spill] sm:$0xff] }
  0xbf   : > { %1413 = vmatpush2.bf16.msra.mxu1 %v2723_v56  ;;  %1451 = vmatprep.subr.bf16.mxu0 %v3597_v1  ;;  %v3636_v56 = vld [vmem:[#allocation46_spill] sm:$0xff]  ;;  %v3647_v1 = vld [vmem:[#allocation51_spill] sm:$0xff] }
  0xc0   : > { %1414 = vmatprep.subr.bf16.mxu1 %v3598_v2  ;;  %v3648_v2 = vld [vmem:[#allocation58_spill] sm:$0xff] }
  0xc2   : > { %1452 = vmatpush2.bf16.msra.mxu0 %v3599_v3  ;;  %v3649_v3 = vld [vmem:[#allocation53_spill] sm:$0xff] }
  0xc3   : > { %1415 = vmatpush2.bf16.msra.mxu1 %v3600_v4  ;;  %1453 = vmatprep.subr.bf16.mxu0 %v3601_v5  ;;  %v3650_v4 = vld [vmem:[#allocation60_spill] sm:$0xff]  ;;  %v3651_v5 = vld [vmem:[#allocation55_spill] sm:$0xff] }
  0xc4   : > { %1416 = vmatprep.subr.bf16.mxu1 %v3602_v6  ;;  %v3652_v6 = vld [vmem:[#allocation62_spill] sm:$0xff] }
  0xc6   : > { %1454 = vmatpush2.bf16.msra.mxu0 %v3603_v7  ;;  %v3653_v7 = vld [vmem:[#allocation57_spill] sm:$0xff] }
  0xc7   : > { %1417 = vmatpush2.bf16.msra.mxu1 %v3604_v8  ;;  %1455 = vmatprep.subr.bf16.mxu0 %v3605_v10  ;;  %v3654_v8 = vld [vmem:[#allocation64_spill] sm:$0xff]  ;;  %v3656_v10 = vld [vmem:[#allocation66_spill] sm:$0xff] }
  0xc8   : > { %1418 = vmatprep.subr.bf16.mxu1 %v3606_v11  ;;  %v3657_v11 = vld [vmem:[#allocation61_spill] sm:$0xff] }
  0xca   : > { %1456 = vmatpush2.bf16.msra.mxu0 %v3607_v14  ;;  %v3660_v14 = vld [vmem:[#allocation70_spill] sm:$0xff] }
  0xcb   : > { %1419 = vmatpush2.bf16.msra.mxu1 %v3608_v15  ;;  %1457 = vmatprep.subr.bf16.mxu0 %v3609_v16  ;;  %v3661_v15 = vld [vmem:[#allocation65_spill] sm:$0xff]  ;;  %v3662_v16 = vld [vmem:[#allocation72_spill] sm:$0xff] }
  0xcc   : > { %1470 = vmatprep.subr.bf16.mxu1 %v3610_v17  ;;  %v3663_v17 = vld [vmem:[#allocation67_spill] sm:$0xff] }
  0xce   : > { %1421 = vmatmul.mubr.bf16.vlgmr.msra.gmra.mxu1 %v1376_v12  ;;  %1458 = vmatpush2.bf16.msra.mxu0 %v3611_v19  ;;  %v3658_v12 = vld [vmem:[#allocation68_spill] sm:$0xff]  ;;  %v3665_v19 = vld [vmem:[#allocation69_spill] sm:$0xff] }
  0xcf   : > { %1471 = vmatpush1.bf16.msra.mxu1 %v3612_v20  ;;  %1459 = vmatprep.subr.bf16.mxu0 %v3613_v22  ;;  %v3666_v20 = vld [vmem:[#allocation76_spill] sm:$0xff]  ;;  %v3668_v22 = vld [vmem:[#allocation78_spill] sm:$0xff] }
  0xd0   : > { %1472 = vmatprep.subr.bf16.mxu1 %v3614_v23  ;;  %1502 = vmatprep.mubr.bf16.mxu1 %v1381_v18  ;;  %v3664_v18 = vld [vmem:[#allocation74_spill] sm:$0xff]  ;;  %v1371_v23 = vld [vmem:[%s3208_s26 + $0x20] sm:$0xff] }
  0xd2   : > { %1460 = vmatpush2.bf16.msra.mxu0 %v3615_v26  ;;  %v1380_v26 = vpack.c.bf16 %v1371_v23, %v1371_v23 }
  0xd3   : > { %1473 = vmatpush1.bf16.msra.mxu1 %v3616_v27  ;;  %1511 = vmatprep.subr.bf16.mxu0 %v3617_v28  ;;  %v3671_v27 = vld [vmem:[#allocation75_spill] sm:$0xff]  ;;  %v3672_v28 = vld [vmem:[#allocation77_spill] sm:$0xff] }
  0xd4   : > { %1474 = vmatprep.subr.bf16.mxu1 %v3618_v29  ;;  %v3673_v29 = vld [vmem:[#allocation79_spill] sm:$0xff] }
  0xd5   : > { %1462 = vmatmul.mubr.bf16.vlgmr.msra.gmra.mxu0 %v1378_v24  ;;  %v3669_v24 = vld [vmem:[#allocation73_spill] sm:$0xff] }
  0xd6   : > { %1512 = vmatpush1.bf16.msra.mxu0 %v3619_v31  ;;  %1543 = vmatprep.mubr.bf16.mxu0 %v1383_v30  ;;  %v1373_v30 = vld [vmem:[%s3208_s26 + $0x30] sm:$0xff]  ;;  %v1375_v31 = vld [vmem:[%s3208_s26 + $0x40] sm:$0xff] }
  0xd7   : > { %1475 = vmatpush1.bf16.msra.mxu1 %v3620_v32  ;;  %1513 = vmatprep.subr.bf16.mxu0 %v3621_v33  ;;  %v1382_v32 = vpack.c.bf16 %v1373_v30, %v1373_v30  ;;  %v1384_v33 = vpack.c.bf16 %v1375_v31, %v1375_v31 }
  0xd8   : > { %1476 = vmatprep.subr.bf16.mxu1 %v3622_v34 }
  0xda   : > { %1514 = vmatpush1.bf16.msra.mxu0 %v3623_v35 }
  0xdb   : > { %1477 = vmatpush1.bf16.msra.mxu1 %v3624_v36  ;;  %1515 = vmatprep.subr.bf16.mxu0 %v3625_v37 }
  0xdc   : > { %1478 = vmatprep.subr.bf16.mxu1 %v3626_v38 }
  0xde   : > { %1516 = vmatpush1.bf16.msra.mxu0 %v3627_v39 }
  0xdf   : > { %1479 = vmatpush1.bf16.msra.mxu1 %v3628_v40  ;;  %1517 = vmatprep.subr.bf16.mxu0 %v3629_v41 }
  0xe0   : > { %1480 = vmatprep.subr.bf16.mxu1 %v3630_v42 }
  0xe2   : > { %1518 = vmatpush1.bf16.msra.mxu0 %v3631_v43 }
  0xe3   : > { %1481 = vmatpush1.bf16.msra.mxu1 %v3632_v44  ;;  %1519 = vmatprep.subr.bf16.mxu0 %v3633_v45 }
  0xe4   : > { %1482 = vmatprep.subr.bf16.mxu1 %v3634_v50 }
  0xe6   : > { %1520 = vmatpush1.bf16.msra.mxu0 %v3635_v52 }
  0xe7   : > { %1483 = vmatpush1.bf16.msra.mxu1 %v3636_v56  ;;  %1521 = vmatprep.subr.bf16.mxu0 %v3637_v47 }
  0xe8   : > { %1484 = vmatprep.subr.bf16.mxu1 %v3638_v51 }
  0xea   : > { %1522 = vmatpush1.bf16.msra.mxu0 %v3639_v60 }
  0xeb   : > { %1485 = vmatpush1.bf16.msra.mxu1 %v3640_v57  ;;  %1523 = vmatprep.subr.bf16.mxu0 %v3641_v61 }
  0xec   : > { %1486 = vmatprep.subr.bf16.mxu1 %v3642_v46 }
  0xee   : > { %1524 = vmatpush1.bf16.msra.mxu0 %v3643_v48 }
  0xef   : > { %1487 = vmatpush2.bf16.msra.mxu1 %v3644_v58  ;;  %1525 = vmatprep.subr.bf16.mxu0 %v3645_v53 }
  0xf0   : > { %1488 = vmatprep.subr.bf16.mxu1 %v3646_v0 }
  0xf2   : > { %1526 = vmatpush1.bf16.msra.mxu0 %v3647_v1 }
  0xf3   : > { %1489 = vmatpush2.bf16.msra.mxu1 %v3648_v2  ;;  %1527 = vmatprep.subr.bf16.mxu0 %v3649_v3 }
  0xf4   : > { %1490 = vmatprep.subr.bf16.mxu1 %v3650_v4 }
  0xf6   : > { %1528 = vmatpush2.bf16.msra.mxu0 %v3651_v5 }
  0xf7   : > { %1491 = vmatpush2.bf16.msra.mxu1 %v3652_v6  ;;  %1529 = vmatprep.subr.bf16.mxu0 %v3653_v7 }
  0xf8   : > { %1492 = vmatprep.subr.bf16.mxu1 %v3654_v8 }
  0xfa   : > { %1530 = vmatpush2.bf16.msra.mxu0 %v3655_v9 }
  0xfb   : > { %1493 = vmatpush2.bf16.msra.mxu1 %v3656_v10  ;;  %1531 = vmatprep.subr.bf16.mxu0 %v3657_v11 }
  0xfc   : > { %1494 = vmatprep.subr.bf16.mxu1 %v3658_v12 }
  0xfe   : > { %1532 = vmatpush2.bf16.msra.mxu0 %v3659_v13 }
  0xff   : > { %1495 = vmatpush2.bf16.msra.mxu1 %v3660_v14  ;;  %1533 = vmatprep.subr.bf16.mxu0 %v3661_v15 }
 0x100   : > { %1496 = vmatprep.subr.bf16.mxu1 %v3662_v16 }
 0x102   : > { %1534 = vmatpush2.bf16.msra.mxu0 %v3663_v17 }
 0x103   : > { %1497 = vmatpush2.bf16.msra.mxu1 %v3664_v18  ;;  %1535 = vmatprep.subr.bf16.mxu0 %v3665_v19 }
 0x104   : > { %1498 = vmatprep.subr.bf16.mxu1 %v3666_v20 }
 0x106   : > { %1536 = vmatpush2.bf16.msra.mxu0 %v3667_v21 }
 0x107   : > { %1499 = vmatpush2.bf16.msra.mxu1 %v3668_v22  ;;  %1537 = vmatprep.subr.bf16.mxu0 %v3669_v24 }
 0x108   : > { %1500 = vmatprep.subr.bf16.mxu1 %v3670_v25 }
 0x10a   : > { %1538 = vmatpush2.bf16.msra.mxu0 %v3671_v27 }
 0x10b   : > { %1501 = vmatpush2.bf16.msra.mxu1 %v3192_v62  ;;  %1539 = vmatprep.subr.bf16.mxu0 %v3672_v28 }
 0x10c   : > { %1566 = vmatprep.subr.bf16.mxu1 %v3212_v55 }
 0x10d   : > { %v1181_v62 = vpop.f32.mrf.mxu0 }
 0x10e   : > { %1503 = vmatmul.mubr.bf16.vlgmr.msra.gmra.mxu1 %v1380_v26  ;;  %1540 = vmatpush2.bf16.msra.mxu0 %v3673_v29  ;;  %v1224_v55 = vpop.f32.mrf.mxu1 }
 0x10f   : > { %1567 = vmatpush1.bf16.msra.mxu1 %v3217_v54  ;;  %1541 = vmatprep.subr.bf16.mxu0 %v3186_v59  ;;  %v1183_v34 = vpop.f32.mrf.mxu0  ;;  %v1225_v59 = vadd.f32 %v1224_v55, %v1181_v62 }
 0x110   : > { %1584 = vmatprep.mubr.bf16.mxu1 %v3596_v49  ;;  %v1226_v35 = vpop.f32.mrf.mxu1 }
 0x111   : > { %v1185_v36 = vpop.f32.mrf.mxu0  ;;  %v1227_v49 = vadd.f32 %v1226_v35, %v1183_v34 }
 0x112   : > { %1542 = vmatpush2.bf16.msra.mxu0 %v3197_v63  ;;  %v1228_v37 = vpop.f32.mrf.mxu1 }
 0x113   : > { %v1187_v54 = vpop.f32.mrf.mxu0  ;;  %v1229_v63 = vadd.f32 %v1228_v37, %v1185_v36 }
 0x114   : > { %v1230_v38 = vpop.f32.mrf.mxu1 }
 0x115   : > { %1544 = vmatmul.mubr.bf16.vlgmr.msra.gmra.mxu0 %v1382_v32  ;;  %v1231_v52 = vadd.f32 %v1230_v38, %v1187_v54 }
 0x116   : > { %2095 = vmatmul.mubr.msk.bf16.vlgmr.msra.gmra.mxu1 %vm1134_vm1, %v1384_v33 }
 0x14d   : > { %v1267_v39 = vpop.f32.mrf.mxu0 }
 0x14e   : > { %v1310_v40 = vpop.f32.mrf.mxu1  ;;  %v1268_v42 = vadd.f32 %v1267_v39, %v1225_v59 }
 0x14f   : > { %v1269_v41 = vpop.f32.mrf.mxu0 }
 0x150   : > { %v1312_v43 = vpop.f32.mrf.mxu1  ;;  %v1270_v45 = vadd.f32 %v1269_v41, %v1227_v49  ;;  %v1311_v56 = vadd.f32 %v1310_v40, %v1268_v42 }
 0x151   : > { %v1271_v44 = vpop.f32.mrf.mxu0 }
 0x152   : > { %v1272_v47 = vadd.f32 %v1271_v44, %v1229_v63  ;;  %v1314_v51 = vpop.f32.mrf.mxu1  ;;  %v1313_v57 = vadd.f32 %v1312_v43, %v1270_v45 }
 0x153   : > { %v1273_v50 = vpop.f32.mrf.mxu0 }
 0x154   : > { %v1274_v61 = vadd.f32 %v1273_v50, %v1231_v52  ;;  %v1315_v58 = vadd.f32 %v1314_v51, %v1272_v47  ;;  %v1316_v0 = vpop.f32.mrf.mxu1 }
 0x155   : > { %v1353_v60 = vpop.f32.mrf.mxu0 }
 0x156   : > { %v3365_v46 = vadd.f32 %v1353_v60, %v1311_v56  ;;  %v1317_v2 = vadd.f32 %v1316_v0, %v1274_v61 }
 0x157   : > { %v1355_v48 = vpop.f32.mrf.mxu0 }
 0x158   : > { %v1356_v53 = vadd.f32 %v1355_v48, %v1313_v57  ;;  %v1616_v6 = vrot.slane %v3365_v46, 1  ;;  %v1640_v10 = vrot.slane %v3365_v46, 2  ;;  %v1664_v56 = vrot.slane %v3365_v46, 3 }
 0x159   : > { %v1357_v1 = vpop.f32.mrf.mxu0 }
 0x15a   : > { %1364 = vst.msk [vmem:[#allocation2 + $0x18] sm:$0xff] %vm1363_vm2, %v1356_v53  ;;  %v3368_v3 = vadd.f32 %v1357_v1, %v1315_v58 }
 0x15b   : > { %v1359_v4 = vpop.f32.mrf.mxu0 }
 0x15c   : > { %v1360_v5 = vadd.f32 %v1359_v4, %v1317_v2  ;;  %v1618_v7 = vrot.slane %v3368_v3, 1  ;;  %v1642_v9 = vrot.slane %v3368_v3, 2  ;;  %v1666_v61 = vrot.slane %v3368_v3, 3 }
 0x15e   : > { %1366 = vst.msk [vmem:[#allocation2 + $0x28] sm:$0xff] %vm1363_vm2, %v1360_v5  ;;  %v1619_v8 = vsel %vm1614_vm3, %v1616_v6, %v1618_v7  ;;  %v1643_v11 = vsel %vm1638_vm4, %v1640_v10, %v1642_v9  ;;  %v1667_v53 = vsel %vm1662_vm6, %v1664_v56, %v1666_v61 }
 0x15f   : > { %1624 = vrot.lane.b32.xlu0 %v1619_v8, %s2349_s9 }
 0x163   : > { %1648 = vrot.lane.b32.xlu0 %v1643_v11, %s2350_s27 }
 0x18e   : > { %v1422_v12 = vpop.f32.mrf.mxu1 }
 0x190   : > { %v1424_v13 = vpop.f32.mrf.mxu1 }
 0x192   : > { %v1426_v14 = vpop.f32.mrf.mxu1 }
 0x194   : > { %v1427_v15 = vpop.f32.mrf.mxu1 }
 0x195   : > { %v1463_v16 = vpop.f32.mrf.mxu0 }
 0x196   : > { %v1464_v23 = vadd.f32 %v1463_v16, %v1422_v12 }
 0x197   : > { %v1465_v17 = vpop.f32.mrf.mxu0 }
 0x198   : > { %v1466_v25 = vadd.f32 %v1465_v17, %v1424_v13  ;;  %v1683_v17 = vld [vmem:[#allocation2 + $0x28] sm:$0xff] }
 0x199   : > { %v1467_v18 = vpop.f32.mrf.mxu0 }
 0x19b   : > { %v1468_v19 = vpop.f32.mrf.mxu0 }
 0x1ce   : > { %v1504_v20 = vpop.f32.mrf.mxu1 }
 0x1cf   : > { %v1505_v26 = vadd.f32 %v1504_v20, %v1464_v23  ;;  %v2096_v23 = vld [vmem:[%s3436_s3] ss:$0 sm:$0xff] }
 0x1d0   : > { %v1506_v21 = vpop.f32.mrf.mxu1 }
 0x1d1   : > { %v1507_v29 = vadd.f32 %v1506_v21, %v1466_v25  ;;  %v1625_v0 = vpop.permute.xlu0 %1624 }
 0x1d2   : > { %v1508_v22 = vpop.f32.mrf.mxu1  ;;  %v1632_v20 = vadd.f32 %v1625_v0, %v3365_v46 }
 0x1d4   : > { %v1509_v24 = vpop.f32.mrf.mxu1 }
 0x1d5   : > { %v1545_v27 = vpop.f32.mrf.mxu0  ;;  %v1649_v1 = vpop.permute.xlu0 %1648 }
 0x1d6   : > { %v1586_v28 = vpop.f32.mrf.mxu1  ;;  %v1546_v30 = vadd.f32 %v1545_v27, %v1505_v26  ;;  %v1690_v26 = vrot.slane %v1683_v17, 4  ;;  %v1656_v27 = vadd.f32 %v1649_v1, %v1632_v20 }
 0x1d7   : > { %v1547_v31 = vpop.f32.mrf.mxu0 }
 0x1d8   : > { %v1588_v32 = vpop.f32.mrf.mxu1  ;;  %v1587_v33 = vadd.f32 %v1586_v28, %v1546_v30  ;;  %v1548_v62 = vadd.f32 %v1547_v31, %v1507_v29 }
 0x1d9   : > { %v1549_v55 = vpop.f32.mrf.mxu0 }
 0x1da   : > { %v1590_v34 = vpop.f32.mrf.mxu1  ;;  %v1595_v35 = vrot.slane %v1587_v33, 4  ;;  %v1589_v36 = vadd.f32 %v1588_v32, %v1548_v62  ;;  %v332_v55 = vld [vmem:[%s3437_s4] sm:$0x1f] }
 0x1db   : > { %v1550_v37 = vpop.f32.mrf.mxu0 }
 0x1dc   : > { %v1591_v54 = vpop.f32.mrf.mxu1  ;;  %1599 = vst [vmem:[#allocation2 + $0x30] ss:$-44 sps:$4 sm:$0xff] %v1595_v35   ;;  %v1596_v38 = vrot.slane %v1589_v36, 4 }
 0x1de   : > { %1604 = vst.msk [vmem:[#allocation2 + $0x38] sm:$0xf] %vm1603_vm5, %v1596_v38 }
 0x1e3   : > { %v1609_v39 = vld [vmem:[#allocation2 + $0x30] sm:$0x1]  ;;  %v1608_v40 = vld [vmem:[#allocation2] sm:$0xe0] }
 0x1e4   : > { %v1634_v59 = vld [vmem:[#allocation2] sm:$0xc0]  ;;  %v1620_v41 = vrot.slane %v1609_v39, 1  ;;  %v1615_v49 = vrot.slane %v1608_v40, 1  ;;  %v1635_v50 = vld [vmem:[#allocation2 + $0x30] sm:$0x3] }
 0x1e5   : > { %v1658_v42 = vld [vmem:[#allocation2] sm:$0x80]  ;;  %v1639_v63 = vrot.slane %v1634_v59, 2  ;;  %v1659_v52 = vld [vmem:[#allocation2 + $0x30] sm:$0x7]  ;;  %v1644_v60 = vrot.slane %v1635_v50, 2 }
 0x1e6   : > { %v1621_v43 = vsel %vm1614_vm3, %v1618_v7, %v1620_v41  ;;  %v1617_v44 = vsel %vm1614_vm3, %v1615_v49, %v1616_v6  ;;  %v1663_v45 = vrot.slane %v1658_v42, 3  ;;  %v1668_v57 = vrot.slane %v1659_v52, 3  ;;  %v1605_v5 = vld [vmem:[#allocation2] sm:$0xf0] }
 0x1e7   : > { %1626 = vrot.lane.b32.xlu1 %v1621_v43, %s2349_s9  ;;  %1622 = vrot.lane.b32.xlu0 %v1617_v44, %s2349_s9  ;;  %v1641_v47 = vsel %vm1638_vm4, %v1639_v63, %v1640_v10  ;;  %v1645_v48 = vsel %vm1638_vm4, %v1642_v9, %v1644_v60  ;;  %v1712_v6 = vlaneseq  ;;  %v1682_v10 = vld [vmem:[#allocation2 + $0x18] sm:$0xff] }
 0x1e8   : > { %v1665_v51 = vsel %vm1662_vm6, %v1663_v45, %v1664_v56  ;;  %v1669_v58 = vsel %vm1662_vm6, %v1666_v61, %v1668_v57  ;;  %v1684_v9 = vld [vmem:[#allocation2 + $0x38] sm:$0xf]  ;;  %v1689_v15 = vrot.slane %v1682_v10, 4 }
 0x1e9   : > { %v1713_v13 = vshrl.u32 %v1712_v6, 7  ;;  %v1692_v19 = vrot.slane %v1684_v9, 4 }
 0x1ea   : > { %v1691_v62 = vsel %vm1688_vm7, %v1689_v15, %v1690_v26 }
 0x1eb   : > { %1646 = vrot.lane.b32.xlu1 %v1641_v47, %s2350_s27  ;;  %1670 = vrot.lane.b32.xlu0 %v1665_v51, %s2351_s28  ;;  %v1715_v24 = vadd.s32 16, %v1713_v13  ;;  %v1759_v46 = vsub.s32 1, %v1713_v13  ;;  %v1778_v36 = vsub.s32 2, %v1713_v13  ;;  %v1797_v37 = vsub.s32 3, %v1713_v13 }
 0x1ec   : > { %v1719_v39 = vadd.s32 4294967294, %v1713_v13  ;;  %v1816_v41 = vsub.s32 4, %v1713_v13  ;;  %v1753_v43 = vsub.s32 0, %v1713_v13 }
 0x1ed   : > { %v1721_v33 = vadd.s32 4294967294, %v1715_v24  ;;  %v1760_v59 = vrot.slane %v332_v55, %v1759_v46  ;;  %v1779_v44 = vrot.slane %v332_v55, %v1778_v36  ;;  %v1798_v63 = vrot.slane %v332_v55, %v1797_v37 }
 0x1ee   : > { %vm1722_vm9 = vcmp.ge.s32.totalorder %v1719_v39, 0  ;;  %v1817_v47 = vrot.slane %v332_v55, %v1816_v41  ;;  %v1754_v57 = vrot.slane %v332_v55, %v1753_v43  ;;  %v1839_v37 = vstv %s330_s10 }
 0x1ef   : > { %1650 = vrot.lane.b32.xlu1 %v1645_v48, %s2350_s27  ;;  %1674 = vrot.lane.b32.xlu0 %v1669_v58, %s2351_s28  ;;  %vm1727_vm8 = vcmp.lt.s32.totalorder %v1721_v33, 16 }
 0x1f3   : > { %1672 = vrot.lane.b32.xlu1 %v1667_v53, %s2351_s28 }
 0x259   : > { %v1627_v2 = vpop.permute.xlu1 %1626  ;;  %v1623_v4 = vpop.permute.xlu0 %1622 }
 0x25a   : > { %v1631_v7 = vadd.f32 %v1623_v4, %v1605_v5  ;;  %v1633_v14 = vadd.f32 %v1627_v2, %v3368_v3  ;;  %v1693_v3 = vsel %vm1688_vm7, %v1690_v26, %v1692_v19 }
 0x25d   : > { %v1647_v8 = vpop.permute.xlu1 %1646  ;;  %v1671_v11 = vpop.permute.xlu0 %1670 }
 0x25e   : > { %v1655_v12 = vadd.f32 %v1647_v8, %v1631_v7 }
 0x260   : > { %v1679_v16 = vadd.f32 %v1671_v11, %v1655_v12 }
 0x261   : > { %v1651_v18 = vpop.permute.xlu1 %1650  ;;  %v1675_v25 = vpop.permute.xlu0 %1674 }
 0x262   : > { %v1697_v21 = vadd.f32 %v1689_v15, %v1679_v16  ;;  %v1657_v22 = vadd.f32 %v1651_v18, %v1633_v14 }
 0x264   : > { %v1681_v28 = vadd.f32 %v1675_v25, %v1657_v22  ;;  %v1706_v30 = vadd.f32 %v2096_v23, %v1697_v21 }
 0x265   : > { %v1673_v29 = vpop.permute.xlu1 %1672 }
 0x266   : > { %v1699_v31 = vadd.f32 %v1693_v3, %v1681_v28  ;;  %v1680_v32 = vadd.f32 %v1673_v29, %v1656_v27  ;;  %v1709_v54 = vmax.f32 %v1706_v30, 0.0 }
 0x268   : > { %v1708_v34 = vadd.f32 %v2096_v23, %v1699_v31  ;;  %v1698_v35 = vadd.f32 %v1691_v62, %v1680_v32  ;;  %v1740_v45 = vrot.slane %v1709_v54, 4 }
 0x26a   : > { %v1711_v38 = vmax.f32 %v1708_v34, 0.0  ;;  %v1707_v40 = vadd.f32 %v2096_v23, %v1698_v35 }
 0x26c   : > { %v1743_v49 = vrot.slane %v1711_v38, 4  ;;  %v1710_v42 = vmax.f32 %v1707_v40, 0.0 }
 0x26e   : > { %v1750_v50 = vsel %vm1727_vm8, %v1743_v49, 0.0  ;;  %v1741_v52 = vrot.slane %v1710_v42, 4 }
 0x26f   : > { %v1763_v56 = vmul.f32 %v1760_v59, %v1750_v50  ;;  %v1782_v61 = vmul.f32 %v1779_v44, %v1750_v50  ;;  %v1801_v1 = vmul.f32 %v1798_v63, %v1750_v50  ;;  %v1820_v6 = vmul.f32 %v1817_v47, %v1750_v50 }
 0x270   : > { %v1742_v51 = vsel %vm1688_vm7, %v1740_v45, %v1741_v52  ;;  %v1744_v60 = vsel %vm1688_vm7, %v1741_v52, %v1743_v49 }
 0x271   : > { %v1748_v48 = vsel %vm1722_vm9, %v1742_v51, 0.0  ;;  %v1762_v58 = vmul.f32 %v1760_v59, %v1744_v60  ;;  %v1781_v53 = vmul.f32 %v1779_v44, %v1744_v60  ;;  %v1800_v0 = vmul.f32 %v1798_v63, %v1744_v60 }
 0x272   : > { %v1770_v2 = vrot.slane %v1763_v56, 1  ;;  %v1819_v5 = vmul.f32 %v1817_v47, %v1744_v60  ;;  %v1756_v7 = vmul.f32 %v1754_v57, %v1744_v60  ;;  %v1761_v10 = vmul.f32 %v1760_v59, %v1748_v48 }
 0x273   : > { %v1768_v4 = vrot.slane %v1762_v58, 1  ;;  %v1787_v8 = vrot.slane %v1781_v53, 2  ;;  %v1780_v11 = vmul.f32 %v1779_v44, %v1748_v48  ;;  %v1789_v9 = vrot.slane %v1782_v61, 2 }
 0x274   : > { %v1806_v13 = vrot.slane %v1800_v0, 3  ;;  %v1799_v14 = vmul.f32 %v1798_v63, %v1748_v48  ;;  %v1808_v16 = vrot.slane %v1801_v1, 3  ;;  %v1767_v17 = vrot.slane %v1761_v10, 1 }
 0x275   : > { %v1771_v12 = vsel %vm1614_vm3, %v1768_v4, %v1770_v2  ;;  %v1818_v18 = vmul.f32 %v1817_v47, %v1748_v48  ;;  %v1790_v19 = vsel %vm1638_vm4, %v1787_v8, %v1789_v9  ;;  %v1825_v20 = vrot.slane %v1819_v5, 4 }
 0x276   : > { %v1775_v15 = vadd.f32 %v1771_v12, %v1756_v7  ;;  %v1755_v21 = vmul.f32 %v1754_v57, %v1748_v48  ;;  %v1786_v22 = vrot.slane %v1780_v11, 2  ;;  %v1769_v24 = vsel %vm1614_vm3, %v1767_v17, %v1768_v4 }
 0x277   : > { %v1805_v25 = vrot.slane %v1799_v14, 3  ;;  %v1809_v26 = vsel %vm1662_vm6, %v1806_v13, %v1808_v16  ;;  %v1827_v27 = vrot.slane %v1820_v6, 4  ;;  %v1824_v30 = vrot.slane %v1818_v18, 4 }
 0x278   : > { %v1794_v23 = vadd.f32 %v1790_v19, %v1775_v15  ;;  %v1774_v28 = vadd.f32 %v1769_v24, %v1755_v21  ;;  %v1788_v29 = vsel %vm1638_vm4, %v1786_v22, %v1787_v8 }
 0x279   : > { %v1828_v31 = vsel %vm1688_vm7, %v1825_v20, %v1827_v27  ;;  %v1807_v46 = vsel %vm1662_vm6, %v1805_v25, %v1806_v13  ;;  %v1826_v34 = vsel %vm1688_vm7, %v1824_v30, %v1825_v20 }
 0x27a   : > { %v1813_v3 = vadd.f32 %v1809_v26, %v1794_v23  ;;  %v1793_v32 = vadd.f32 %v1788_v29, %v1774_v28 }
 0x27c   : > { %v1832_v33 = vadd.f32 %v1828_v31, %v1813_v3  ;;  %v1812_v62 = vadd.f32 %v1807_v46, %v1793_v32 }
 0x27e   : > { %v1836_v55 = vsel %vm1363_vm2, %v1832_v33, 0.0  ;;  %v1831_v35 = vadd.f32 %v1826_v34, %v1812_v62 }
 0x27f   : > { %1837 = vadd.xlane.f32.xlu0 %v1836_v55 }
 0x280   : > { %v1833_v36 = vsel %vm1363_vm2, %v1831_v35, 0.0 }
 0x281   : > { %1834 = vadd.xlane.f32.xlu1 %v1833_v36 }
 0x308   : > { %v1838_v54 = vpop.xlane.xlu0 %1837 }
 0x309   : > { %v1841_v38 = vadd.f32 %v1839_v37, %v1838_v54 }
 0x30a   : > { %v1835_v39 = vpop.xlane.xlu1 %1834 }
 0x30b   : > { %1843 = vst.msk [vmem:[%s327_s14 + $0x8] sm:$0xff] %vm1134_vm1, %v1841_v38  ;;  %v1840_v40 = vadd.f32 %v1839_v37, %v1835_v39 }
 0x30d   : > { %1842 = vst.msk [vmem:[%s327_s14] sm:$0xff] %vm1134_vm1, %v1840_v40 }
 0x30e PF: > { %s17_s25 = sadd.s32 1, %s2346_s25   ;;  %s3674_s23 = smov %s2342_s24 }
 0x30f   : > { %p14_p5 = scmp.ge.s32.totalorder %s17_s25, 4   ;;  %s3675_s24 = smov %s3677_s5 }
 0x311   :  { %16 = sbr.rel (!%p14_p5) target bundleno = 2 (0x2), region = 77 }

</bundles_post_ra>
